<compile_context>
chip_gen: v7x
topology: tpu7x:2x2x1
jax: 0.10.0
libtpu: 0.0.40
codegen_flags: <defaults>
</compile_context>

<pallas_src>
import functools

import jax
import jax.numpy as jnp
from jax.experimental import pallas as pl
from jax.experimental.pallas import tpu as pltpu


def _conv_bn_relu_kernel(x_ref, w_ref, scale_ref, bias_ref, out_ref, *,
                         H_out, W_out, C_in, C_out, KH, KW):
    # x_ref block: (1, H_p, W_p, C_in) -- one padded NHWC image.
    # Unrolled static loop over the KH*KW kernel taps: each tap is one
    # (H_out*W_out, C_in) x (C_in, C_out) MXU matmul accumulated in f32.
    acc = jnp.zeros((H_out * W_out, C_out), jnp.float32)
    for kh in range(KH):
        for kw in range(KW):
            patch = x_ref[0, kh:kh + H_out, kw:kw + W_out, :]   # (H_out, W_out, C_in)
            lhs = patch.reshape(H_out * W_out, C_in)
            w_tap = w_ref[kh * KW + kw]                         # (C_in, C_out)
            acc = acc + jnp.dot(lhs, w_tap, preferred_element_type=jnp.float32)

    # Folded (eval-mode) BatchNorm + ReLU, single lane-dense store.
    y = acc * scale_ref[...] + bias_ref[...]                    # (1,C_out) broadcasts
    out_ref[0] = jnp.maximum(y, 0.0).astype(out_ref.dtype)


def basic_conv2d(x, weight, gamma, beta, running_mean, running_var,
                 *, stride=1, padding=0, eps=1e-3):
    """Pallas TPU implementation of BasicConv2d.forward (eval-mode BN).

    x:      (N, C_in, H, W)        float32, NCHW (PyTorch layout)
    weight: (C_out, C_in, KH, KW)  float32, OIHW (PyTorch layout)
    gamma, beta, running_mean, running_var: (C_out,)
    Returns: (N, C_out, H_out, W_out) float32.
    """
    assert stride == 1  # TODO(synk): support stride > 1 / dilation / groups
    N, C_in, H, W = x.shape
    C_out, C_in_w, KH, KW = weight.shape
    assert C_in_w == C_in

    H_p, W_p = H + 2 * padding, W + 2 * padding
    H_out = H_p - KH + 1
    W_out = W_p - KW + 1

    # ---- layout glue (outside the kernel) ----
    x_nhwc = jnp.transpose(x, (0, 2, 3, 1)).astype(jnp.float32)
    x_pad = jnp.pad(x_nhwc, ((0, 0), (padding, padding), (padding, padding), (0, 0)))
    w_taps = jnp.transpose(weight, (2, 3, 1, 0)).reshape(KH * KW, C_in, C_out)
    w_taps = w_taps.astype(jnp.float32)
    scale = (gamma / jnp.sqrt(running_var.astype(jnp.float32) + eps)).astype(jnp.float32)
    bias = (beta.astype(jnp.float32) - running_mean.astype(jnp.float32) * scale)
    scale2 = scale.reshape(1, C_out)
    bias2 = bias.reshape(1, C_out)

    kernel = functools.partial(
        _conv_bn_relu_kernel,
        H_out=H_out, W_out=W_out, C_in=C_in, C_out=C_out, KH=KH, KW=KW)

    flops = 2 * N * H_out * W_out * KH * KW * C_in * C_out \
        + 3 * N * H_out * W_out * C_out
    bytes_accessed = 4 * (int(x_pad.size) + int(w_taps.size)
                          + 2 * C_out + N * H_out * W_out * C_out)

    out = pl.pallas_call(
        kernel,
        out_shape=jax.ShapeDtypeStruct((N, H_out * W_out, C_out), jnp.float32),
        grid_spec=pltpu.PrefetchScalarGridSpec(
            num_scalar_prefetch=0,
            grid=(N,),  # one image per grid step; independent -> "parallel"
            in_specs=[
                pl.BlockSpec((1, H_p, W_p, C_in), lambda n: (n, 0, 0, 0)),
                pl.BlockSpec((KH * KW, C_in, C_out), lambda n: (0, 0, 0)),
                pl.BlockSpec((1, C_out), lambda n: (0, 0)),
                pl.BlockSpec((1, C_out), lambda n: (0, 0)),
            ],
            out_specs=pl.BlockSpec((1, H_out * W_out, C_out), lambda n: (n, 0, 0)),
        ),
        compiler_params=pltpu.CompilerParams(
            dimension_semantics=("parallel",),  # megacore-shardable on v7x
        ),
        cost_estimate=pl.CostEstimate(
            flops=flops, transcendentals=0, bytes_accessed=bytes_accessed),
    )(x_pad, w_taps, scale2, bias2)

    out_nhwc = out.reshape(N, H_out, W_out, C_out)
    return jnp.transpose(out_nhwc, (0, 3, 1, 2))


if __name__ == "__main__":
    key = jax.random.PRNGKey(0)
    k_x, k_w, k_g, k_b, k_m, k_v = jax.random.split(key, 6)

    # Small shapes consistent with BasicConv2d: batch=2, C_in=4, 16x16 spatial,
    # C_out=8, 3x3 kernel, stride=1, padding=1.
    N, C_in, H, W = 2, 4, 16, 16
    C_out, KH, KW = 8, 3, 3
    padding = 1
    eps = 1e-3

    x = jax.random.normal(k_x, (N, C_in, H, W), dtype=jnp.float32)
    weight = jax.random.normal(k_w, (C_out, C_in, KH, KW), dtype=jnp.float32) * 0.1
    gamma = jax.random.uniform(k_g, (C_out,), jnp.float32, 0.5, 1.5)
    beta = jax.random.normal(k_b, (C_out,), dtype=jnp.float32) * 0.1
    running_mean = jax.random.normal(k_m, (C_out,), dtype=jnp.float32) * 0.1
    running_var = jax.random.uniform(k_v, (C_out,), jnp.float32, 0.5, 1.5)

    out = basic_conv2d(x, weight, gamma, beta, running_mean, running_var,
                       stride=1, padding=padding, eps=eps)
    out = jax.block_until_ready(out)

    # Pure-JAX reference: conv (no bias) -> eval-mode BN -> ReLU.
    conv_ref = jax.lax.conv_general_dilated(
        x, weight, window_strides=(1, 1),
        padding=((padding, padding), (padding, padding)),
        dimension_numbers=("NCHW", "OIHW", "NCHW"))
    scale_ref = gamma / jnp.sqrt(running_var + eps)
    bias_ref = beta - running_mean * scale_ref
    ref = jnp.maximum(
        conv_ref * scale_ref.reshape(1, -1, 1, 1) + bias_ref.reshape(1, -1, 1, 1),
        0.0)

    assert out.shape == ref.shape, (out.shape, ref.shape)
    max_err = float(jnp.max(jnp.abs(out - ref)))
    assert jnp.allclose(out, ref, rtol=1e-4, atol=1e-4), max_err
    print("KERNEL_OK")
</pallas_src>

<mosaic_0001>
module attributes {stable_mosaic.version = 11 : i64} {
  func.func @_conv_bn_relu_kernel(%arg0: i32, %arg1: memref<1x18x18x4xf32, #tpu.memory_space<vmem>>, %arg2: memref<9x4x8xf32, #tpu.memory_space<vmem>>, %arg3: memref<1x8xf32, #tpu.memory_space<vmem>>, %arg4: memref<1x8xf32, #tpu.memory_space<vmem>>, %arg5: memref<1x256x8xf32, #tpu.memory_space<vmem>>) attributes {dimension_semantics = [#tpu.dimension_semantics<parallel>], iteration_bounds = array<i64: 2>, scalar_prefetch = 0 : i64, scratch_operands = 0 : i64, tpu.core_type = #tpu.core_type<tc>, window_params = [{transform_indices = @transform_0, window_bounds = array<i64: 1, 18, 18, 4>}, {pipeline_mode = #tpu.pipeline_mode<synchronous>, transform_indices = @transform_1, window_bounds = array<i64: 9, 4, 8>}, {pipeline_mode = #tpu.pipeline_mode<synchronous>, transform_indices = @transform_2, window_bounds = array<i64: 1, 8>}, {pipeline_mode = #tpu.pipeline_mode<synchronous>, transform_indices = @transform_3, window_bounds = array<i64: 1, 8>}, {transform_indices = @transform_4, window_bounds = array<i64: 1, 256, 8>}]} {
    %cst = arith.constant 0.000000e+00 : f32
    %0 = vector.broadcast %cst : f32 to vector<256x8xf32>
    %c0 = arith.constant 0 : index
    %c0_0 = arith.constant 0 : index
    %c0_1 = arith.constant 0 : index
    %c0_2 = arith.constant 0 : index
    %1 = vector.load %arg1[%c0, %c0_0, %c0_1, %c0_2] : memref<1x18x18x4xf32, #tpu.memory_space<vmem>>, vector<1x16x16x4xf32>
    %2 = vector.shape_cast %1 : vector<1x16x16x4xf32> to vector<16x16x4xf32>
    %3 = vector.shape_cast %2 : vector<16x16x4xf32> to vector<256x4xf32>
    %c0_3 = arith.constant 0 : index
    %c0_4 = arith.constant 0 : index
    %c0_5 = arith.constant 0 : index
    %4 = vector.load %arg2[%c0_3, %c0_4, %c0_5] : memref<9x4x8xf32, #tpu.memory_space<vmem>>, vector<1x4x8xf32>
    %5 = vector.shape_cast %4 : vector<1x4x8xf32> to vector<4x8xf32>
    %cst_6 = arith.constant dense<0.000000e+00> : vector<256x8xf32>
    %6 = tpu.matmul %3, %5, %cst_6 {dimension_numbers = #tpu.dot_dimension_numbers<[1], [0], [0], [1], [0, 0, 1, 1], [], []>} : vector<256x4xf32>, vector<4x8xf32>, vector<256x8xf32> -> vector<256x8xf32>
    %7 = arith.addf %0, %6 : vector<256x8xf32>
    %c0_7 = arith.constant 0 : index
    %c0_8 = arith.constant 0 : index
    %c1 = arith.constant 1 : index
    %c0_9 = arith.constant 0 : index
    %8 = vector.load %arg1[%c0_7, %c0_8, %c1, %c0_9] : memref<1x18x18x4xf32, #tpu.memory_space<vmem>>, vector<1x16x16x4xf32>
    %9 = vector.shape_cast %8 : vector<1x16x16x4xf32> to vector<16x16x4xf32>
    %10 = vector.shape_cast %9 : vector<16x16x4xf32> to vector<256x4xf32>
    %c1_10 = arith.constant 1 : index
    %c0_11 = arith.constant 0 : index
    %c0_12 = arith.constant 0 : index
    %11 = vector.load %arg2[%c1_10, %c0_11, %c0_12] : memref<9x4x8xf32, #tpu.memory_space<vmem>>, vector<1x4x8xf32>
    %12 = vector.shape_cast %11 : vector<1x4x8xf32> to vector<4x8xf32>
    %cst_13 = arith.constant dense<0.000000e+00> : vector<256x8xf32>
    %13 = tpu.matmul %10, %12, %cst_13 {dimension_numbers = #tpu.dot_dimension_numbers<[1], [0], [0], [1], [0, 0, 1, 1], [], []>} : vector<256x4xf32>, vector<4x8xf32>, vector<256x8xf32> -> vector<256x8xf32>
    %14 = arith.addf %7, %13 : vector<256x8xf32>
    %c0_14 = arith.constant 0 : index
    %c0_15 = arith.constant 0 : index
    %c2 = arith.constant 2 : index
    %c0_16 = arith.constant 0 : index
    %15 = vector.load %arg1[%c0_14, %c0_15, %c2, %c0_16] : memref<1x18x18x4xf32, #tpu.memory_space<vmem>>, vector<1x16x16x4xf32>
    %16 = vector.shape_cast %15 : vector<1x16x16x4xf32> to vector<16x16x4xf32>
    %17 = vector.shape_cast %16 : vector<16x16x4xf32> to vector<256x4xf32>
    %c2_17 = arith.constant 2 : index
    %c0_18 = arith.constant 0 : index
    %c0_19 = arith.constant 0 : index
    %18 = vector.load %arg2[%c2_17, %c0_18, %c0_19] : memref<9x4x8xf32, #tpu.memory_space<vmem>>, vector<1x4x8xf32>
    %19 = vector.shape_cast %18 : vector<1x4x8xf32> to vector<4x8xf32>
    %cst_20 = arith.constant dense<0.000000e+00> : vector<256x8xf32>
    %20 = tpu.matmul %17, %19, %cst_20 {dimension_numbers = #tpu.dot_dimension_numbers<[1], [0], [0], [1], [0, 0, 1, 1], [], []>} : vector<256x4xf32>, vector<4x8xf32>, vector<256x8xf32> -> vector<256x8xf32>
    %21 = arith.addf %14, %20 : vector<256x8xf32>
    %c0_21 = arith.constant 0 : index
    %c1_22 = arith.constant 1 : index
    %c0_23 = arith.constant 0 : index
    %c0_24 = arith.constant 0 : index
    %22 = vector.load %arg1[%c0_21, %c1_22, %c0_23, %c0_24] : memref<1x18x18x4xf32, #tpu.memory_space<vmem>>, vector<1x16x16x4xf32>
    %23 = vector.shape_cast %22 : vector<1x16x16x4xf32> to vector<16x16x4xf32>
    %24 = vector.shape_cast %23 : vector<16x16x4xf32> to vector<256x4xf32>
    %c3 = arith.constant 3 : index
    %c0_25 = arith.constant 0 : index
    %c0_26 = arith.constant 0 : index
    %25 = vector.load %arg2[%c3, %c0_25, %c0_26] : memref<9x4x8xf32, #tpu.memory_space<vmem>>, vector<1x4x8xf32>
    %26 = vector.shape_cast %25 : vector<1x4x8xf32> to vector<4x8xf32>
    %cst_27 = arith.constant dense<0.000000e+00> : vector<256x8xf32>
    %27 = tpu.matmul %24, %26, %cst_27 {dimension_numbers = #tpu.dot_dimension_numbers<[1], [0], [0], [1], [0, 0, 1, 1], [], []>} : vector<256x4xf32>, vector<4x8xf32>, vector<256x8xf32> -> vector<256x8xf32>
    %28 = arith.addf %21, %27 : vector<256x8xf32>
    %c0_28 = arith.constant 0 : index
    %c1_29 = arith.constant 1 : index
    %c1_30 = arith.constant 1 : index
    %c0_31 = arith.constant 0 : index
    %29 = vector.load %arg1[%c0_28, %c1_29, %c1_30, %c0_31] : memref<1x18x18x4xf32, #tpu.memory_space<vmem>>, vector<1x16x16x4xf32>
    %30 = vector.shape_cast %29 : vector<1x16x16x4xf32> to vector<16x16x4xf32>
    %31 = vector.shape_cast %30 : vector<16x16x4xf32> to vector<256x4xf32>
    %c4 = arith.constant 4 : index
    %c0_32 = arith.constant 0 : index
    %c0_33 = arith.constant 0 : index
    %32 = vector.load %arg2[%c4, %c0_32, %c0_33] : memref<9x4x8xf32, #tpu.memory_space<vmem>>, vector<1x4x8xf32>
    %33 = vector.shape_cast %32 : vector<1x4x8xf32> to vector<4x8xf32>
    %cst_34 = arith.constant dense<0.000000e+00> : vector<256x8xf32>
    %34 = tpu.matmul %31, %33, %cst_34 {dimension_numbers = #tpu.dot_dimension_numbers<[1], [0], [0], [1], [0, 0, 1, 1], [], []>} : vector<256x4xf32>, vector<4x8xf32>, vector<256x8xf32> -> vector<256x8xf32>
    %35 = arith.addf %28, %34 : vector<256x8xf32>
    %c0_35 = arith.constant 0 : index
    %c1_36 = arith.constant 1 : index
    %c2_37 = arith.constant 2 : index
    %c0_38 = arith.constant 0 : index
    %36 = vector.load %arg1[%c0_35, %c1_36, %c2_37, %c0_38] : memref<1x18x18x4xf32, #tpu.memory_space<vmem>>, vector<1x16x16x4xf32>
    %37 = vector.shape_cast %36 : vector<1x16x16x4xf32> to vector<16x16x4xf32>
    %38 = vector.shape_cast %37 : vector<16x16x4xf32> to vector<256x4xf32>
    %c5 = arith.constant 5 : index
    %c0_39 = arith.constant 0 : index
    %c0_40 = arith.constant 0 : index
    %39 = vector.load %arg2[%c5, %c0_39, %c0_40] : memref<9x4x8xf32, #tpu.memory_space<vmem>>, vector<1x4x8xf32>
    %40 = vector.shape_cast %39 : vector<1x4x8xf32> to vector<4x8xf32>
    %cst_41 = arith.constant dense<0.000000e+00> : vector<256x8xf32>
    %41 = tpu.matmul %38, %40, %cst_41 {dimension_numbers = #tpu.dot_dimension_numbers<[1], [0], [0], [1], [0, 0, 1, 1], [], []>} : vector<256x4xf32>, vector<4x8xf32>, vector<256x8xf32> -> vector<256x8xf32>
    %42 = arith.addf %35, %41 : vector<256x8xf32>
    %c0_42 = arith.constant 0 : index
    %c2_43 = arith.constant 2 : index
    %c0_44 = arith.constant 0 : index
    %c0_45 = arith.constant 0 : index
    %43 = vector.load %arg1[%c0_42, %c2_43, %c0_44, %c0_45] : memref<1x18x18x4xf32, #tpu.memory_space<vmem>>, vector<1x16x16x4xf32>
    %44 = vector.shape_cast %43 : vector<1x16x16x4xf32> to vector<16x16x4xf32>
    %45 = vector.shape_cast %44 : vector<16x16x4xf32> to vector<256x4xf32>
    %c6 = arith.constant 6 : index
    %c0_46 = arith.constant 0 : index
    %c0_47 = arith.constant 0 : index
    %46 = vector.load %arg2[%c6, %c0_46, %c0_47] : memref<9x4x8xf32, #tpu.memory_space<vmem>>, vector<1x4x8xf32>
    %47 = vector.shape_cast %46 : vector<1x4x8xf32> to vector<4x8xf32>
    %cst_48 = arith.constant dense<0.000000e+00> : vector<256x8xf32>
    %48 = tpu.matmul %45, %47, %cst_48 {dimension_numbers = #tpu.dot_dimension_numbers<[1], [0], [0], [1], [0, 0, 1, 1], [], []>} : vector<256x4xf32>, vector<4x8xf32>, vector<256x8xf32> -> vector<256x8xf32>
    %49 = arith.addf %42, %48 : vector<256x8xf32>
    %c0_49 = arith.constant 0 : index
    %c2_50 = arith.constant 2 : index
    %c1_51 = arith.constant 1 : index
    %c0_52 = arith.constant 0 : index
    %50 = vector.load %arg1[%c0_49, %c2_50, %c1_51, %c0_52] : memref<1x18x18x4xf32, #tpu.memory_space<vmem>>, vector<1x16x16x4xf32>
    %51 = vector.shape_cast %50 : vector<1x16x16x4xf32> to vector<16x16x4xf32>
    %52 = vector.shape_cast %51 : vector<16x16x4xf32> to vector<256x4xf32>
    %c7 = arith.constant 7 : index
    %c0_53 = arith.constant 0 : index
    %c0_54 = arith.constant 0 : index
    %53 = vector.load %arg2[%c7, %c0_53, %c0_54] : memref<9x4x8xf32, #tpu.memory_space<vmem>>, vector<1x4x8xf32>
    %54 = vector.shape_cast %53 : vector<1x4x8xf32> to vector<4x8xf32>
    %cst_55 = arith.constant dense<0.000000e+00> : vector<256x8xf32>
    %55 = tpu.matmul %52, %54, %cst_55 {dimension_numbers = #tpu.dot_dimension_numbers<[1], [0], [0], [1], [0, 0, 1, 1], [], []>} : vector<256x4xf32>, vector<4x8xf32>, vector<256x8xf32> -> vector<256x8xf32>
    %56 = arith.addf %49, %55 : vector<256x8xf32>
    %c0_56 = arith.constant 0 : index
    %c2_57 = arith.constant 2 : index
    %c2_58 = arith.constant 2 : index
    %c0_59 = arith.constant 0 : index
    %57 = vector.load %arg1[%c0_56, %c2_57, %c2_58, %c0_59] : memref<1x18x18x4xf32, #tpu.memory_space<vmem>>, vector<1x16x16x4xf32>
    %58 = vector.shape_cast %57 : vector<1x16x16x4xf32> to vector<16x16x4xf32>
    %59 = vector.shape_cast %58 : vector<16x16x4xf32> to vector<256x4xf32>
    %c8 = arith.constant 8 : index
    %c0_60 = arith.constant 0 : index
    %c0_61 = arith.constant 0 : index
    %60 = vector.load %arg2[%c8, %c0_60, %c0_61] : memref<9x4x8xf32, #tpu.memory_space<vmem>>, vector<1x4x8xf32>
    %61 = vector.shape_cast %60 : vector<1x4x8xf32> to vector<4x8xf32>
    %cst_62 = arith.constant dense<0.000000e+00> : vector<256x8xf32>
    %62 = tpu.matmul %59, %61, %cst_62 {dimension_numbers = #tpu.dot_dimension_numbers<[1], [0], [0], [1], [0, 0, 1, 1], [], []>} : vector<256x4xf32>, vector<4x8xf32>, vector<256x8xf32> -> vector<256x8xf32>
    %63 = arith.addf %56, %62 : vector<256x8xf32>
    %c0_63 = arith.constant 0 : index
    %c0_64 = arith.constant 0 : index
    %64 = vector.load %arg3[%c0_63, %c0_64] : memref<1x8xf32, #tpu.memory_space<vmem>>, vector<1x8xf32>
    %65 = vector.broadcast %64 : vector<1x8xf32> to vector<256x8xf32>
    %66 = arith.mulf %63, %65 : vector<256x8xf32>
    %c0_65 = arith.constant 0 : index
    %c0_66 = arith.constant 0 : index
    %67 = vector.load %arg4[%c0_65, %c0_66] : memref<1x8xf32, #tpu.memory_space<vmem>>, vector<1x8xf32>
    %68 = vector.broadcast %67 : vector<1x8xf32> to vector<256x8xf32>
    %69 = arith.addf %66, %68 : vector<256x8xf32>
    %cst_67 = arith.constant 0.000000e+00 : f32
    %70 = vector.broadcast %cst_67 : f32 to vector<256x8xf32>
    %71 = arith.maximumf %69, %70 : vector<256x8xf32>
    %c0_68 = arith.constant 0 : index
    %c0_69 = arith.constant 0 : index
    %c0_70 = arith.constant 0 : index
    %72 = vector.load %arg5[%c0_68, %c0_69, %c0_70] : memref<1x256x8xf32, #tpu.memory_space<vmem>>, vector<1x256x8xf32>
    %73 = vector.shape_cast %72 : vector<1x256x8xf32> to vector<256x8xf32>
    %74 = vector.shape_cast %71 : vector<256x8xf32> to vector<1x256x8xf32>
    tpu.vector_store %arg5[%c0_68, %c0_69, %c0_70], %74 {strides = array<i32>} : memref<1x256x8xf32, #tpu.memory_space<vmem>>, vector<1x256x8xf32>,
    return
  }
  func.func @transform_0(%arg0: i32) -> (i32, i32, i32, i32) {
    %c0_i32 = arith.constant 0 : i32
    %c0_i32_0 = arith.constant 0 : i32
    %c0_i32_1 = arith.constant 0 : i32
    %c0_i32_2 = arith.constant 0 : i32
    return %arg0, %c0_i32, %c0_i32_0, %c0_i32_1 : i32, i32, i32, i32
  }
  func.func @transform_1(%arg0: i32) -> (i32, i32, i32) {
    %c0_i32 = arith.constant 0 : i32
    %c0_i32_0 = arith.constant 0 : i32
    %c0_i32_1 = arith.constant 0 : i32
    %c0_i32_2 = arith.constant 0 : i32
    return %c0_i32, %c0_i32_0, %c0_i32_1 : i32, i32, i32
  }
  func.func @transform_2(%arg0: i32) -> (i32, i32) {
    %c0_i32 = arith.constant 0 : i32
    %c0_i32_0 = arith.constant 0 : i32
    %c0_i32_1 = arith.constant 0 : i32
    return %c0_i32, %c0_i32_0 : i32, i32
  }
  func.func @transform_3(%arg0: i32) -> (i32, i32) {
    %c0_i32 = arith.constant 0 : i32
    %c0_i32_0 = arith.constant 0 : i32
    %c0_i32_1 = arith.constant 0 : i32
    return %c0_i32, %c0_i32_0 : i32, i32
  }
  func.func @transform_4(%arg0: i32) -> (i32, i32, i32) {
    %c0_i32 = arith.constant 0 : i32
    %c0_i32_0 = arith.constant 0 : i32
    %c0_i32_1 = arith.constant 0 : i32
    return %arg0, %c0_i32, %c0_i32_0 : i32, i32, i32
  }
}

</mosaic_0001>

<bundles_post_ra>
// kernel: tpu_custom_call.1
= control target key start
LH: loop header
LB: loop body
LE: loop exit
PB: predicated region body
PF: predicated region fallthrough
CT: control target
= control target key end

     0   :  { %s5402_s15 = smov 0   ;;  %s6508_s0 = inlined_call_operand.vmem [shape: f32[2,18,18,4], index: 0, kind: input, shape index: {}]   ;;  %s6509_s1 = inlined_call_operand.vmem [shape: f32[9,4,8], index: 1, kind: input, shape index: {}]   ;;  %s6510_s2 = inlined_call_operand.vmem [shape: f32[1,8], index: 2, kind: input, shape index: {}]   ;;  %s6511_s3 = inlined_call_operand.vmem [shape: f32[1,8], index: 3, kind: input, shape index: {}]   ;;  %s6512_s4 = inlined_call_operand.vmem [shape: f32[2,256,8], index: 4, kind: output, shape index: {}]  }
   0x1 LB: > { %s3845_s16 = sadd.s32 4294967295, %s5375_s15   ;;  %p3849_p0 = scmp.ge.s32.totalorder %s5375_s15, 1  ;;  %s5375_s15 = sphi %s5402_s15, %s14_s15  }
   0x2   : > { %p162_p1 = scmp.lt.s32.totalorder %s5375_s15, 3 }
   0x4   : > { %p163_p2 = pnand %p3849_p0, %p162_p1 }
   0x6   : > { %166 = sbr.rel (%p163_p2) target bundleno = 527 (0x20f), region = 36 }
   0xd   : > { %v3853_v0 = vld [vmem:[%s6509_s1 + $0x4] sm:$0xf]  ;;  %vm362_vm0 = vcmask 1043456   ;;  %v5416_v1 = vld [vmem:[%s6509_s1 + $0x10] sm:$0xf]  ;;  %p188_p3 = scmp.lt.s32.totalorder %s3845_s16, 1 }
   0xe   : > { %4652 = vmatprep.subr.msk.mxu1 %vm362_vm0, %v3853_v0  ;;  %4852 = vmatprep.subr.msk.mxu0 %vm362_vm0, %v5416_v1  ;;  %v230_v2 = vld [vmem:[%s6509_s1] sm:$0xf]  ;;  %v4118_v3 = vld [vmem:[%s6509_s1 + $0x14] sm:$0xf]  ;;  %vm265_vm1 = vcmask 31744   ;;  %vm3757_vm2 = vcmask 64512  }
   0xf   : > { %4653 = vmatpush3.msk.msra.mxu1 %vm362_vm0, %v3853_v0  ;;  %4853 = vmatpush3.msk.msra.mxu0 %vm362_vm0, %v5416_v1  ;;  %s6623_s16 = smov (!%p188_p3, %s3845_s16), 1  ;;  %v4184_v9 = vld [vmem:[%s6509_s1 + $0x18] sm:$0xf]  ;;  %v5457_v10 = vld [vmem:[%s6509_s1 + $0x8] sm:$0xf] }
  0x10   : > { %4702 = vmatprep.subr.msk.mxu1 %vm362_vm0, %v230_v2  ;;  %4902 = vmatprep.subr.msk.mxu0 %vm362_vm0, %v4118_v3  ;;  %s5360_s25 = smul.u32 432, %s6623_s16  ;;  %v5576_v28 = vld [vmem:[%s6509_s1 + $0x1c] sm:$0xf]  ;;  %v5739_v61 = vld [vmem:[%s6509_s1 + $0xc] sm:$0xf]  ;;  %s4354_s19 = sshll.u32 %s6623_s16, 8 }
  0x11   : > { %s6372_s22 = scalar_lea.vmem %s6512_s4, %s4354_s19 }
  0x12   : > { %s5438_s28 = scalar_lea.vmem %s6508_s0, %s5360_s25 }
  0x13   : > { %v231_v4 = vld [vmem:[%s5438_s28 + $0x1] sm:$0xff]  ;;  %v4020_v5 = vld [vmem:[%s5438_s28 + $0x19] sm:$0xff]  ;;  %v232_v6 = vld [vmem:[%s5438_s28 + $0x9] sm:$0xff] }
  0x14   : > { %4654 = vmatprep.mubr.msk.f32.mxu1 %vm265_vm1, %v231_v4  ;;  %4854 = vmatprep.mubr.msk.f32.mxu0 %vm265_vm1, %v4020_v5  ;;  %v4021_v7 = vld [vmem:[%s5438_s28 + $0x21] sm:$0xff]  ;;  %v5447_v8 = vld [vmem:[%s5438_s28 + $0x31] sm:$0xff]  ;;  %v5462_v11 = vld [vmem:[%s5438_s28 + $0x39] sm:$0xff] }
  0x15   : > { %4655 = vmatmul.mubr.msk.f32.vlgmr.msra.gmra.mrb[0].mxu1 %vm265_vm1, %v232_v6  ;;  %4855 = vmatmul.mubr.msk.f32.vlgmr.msra.gmra.mrb[0].mxu0 %vm265_vm1, %v4021_v7  ;;  %v5468_v12 = vld [vmem:[%s5438_s28 + $0x49] sm:$0xff]  ;;  %v5481_v13 = vld [vmem:[%s5438_s28 + $0x51] sm:$0xff]  ;;  %v5484_v14 = vld [vmem:[%s5438_s28 + $0x61] sm:$0xff] }
  0x16   : > { %4703 = vmatpush3.msk.msra.mxu1 %vm362_vm0, %v230_v2  ;;  %4903 = vmatpush3.msk.msra.mxu0 %vm362_vm0, %v4118_v3  ;;  %v5495_v15 = vld [vmem:[%s5438_s28 + $0x69] sm:$0xff]  ;;  %v5498_v16 = vld [vmem:[%s5438_s28 + $0x79] sm:$0xff]  ;;  %v5509_v17 = vld [vmem:[%s5438_s28 + $0x81] sm:$0xff] }
  0x17   : > { %4657 = vmatprep.mubr.msk.f32.mxu1 %vm265_vm1, %v4020_v5  ;;  %4857 = vmatprep.mubr.msk.f32.mxu0 %vm265_vm1, %v5447_v8  ;;  %v5512_v18 = vld [vmem:[%s5438_s28 + $0x91] sm:$0xff]  ;;  %v5523_v19 = vld [vmem:[%s5438_s28 + $0x99] sm:$0xff]  ;;  %v5526_v20 = vld [vmem:[%s5438_s28 + $0xa9] sm:$0xff] }
  0x18   : > { %4952 = vmatprep.subr.msk.mxu0 %vm362_vm0, %v4184_v9  ;;  %4752 = vmatprep.subr.msk.mxu1 %vm362_vm0, %v5457_v10  ;;  %v5537_v21 = vld [vmem:[%s5438_s28 + $0xb1] sm:$0xff]  ;;  %v5540_v22 = vld [vmem:[%s5438_s28 + $0xc1] sm:$0xff]  ;;  %v5551_v23 = vld [vmem:[%s5438_s28 + $0xc9] sm:$0xff] }
  0x19   : > { %4658 = vmatmul.mubr.msk.f32.gmra.mrb[2].mxu1 %vm265_vm1, %v4021_v7  ;;  %4858 = vmatmul.mubr.msk.f32.gmra.mrb[2].mxu0 %vm265_vm1, %v5462_v11  ;;  %v5554_v24 = vld [vmem:[%s5438_s28 + $0x1a] sm:$0xff]  ;;  %v5565_v25 = vld [vmem:[%s5438_s28 + $0x22] sm:$0xff]  ;;  %v5571_v27 = vld [vmem:[%s5438_s28 + $0x32] sm:$0xff] }
  0x1a   : > { %4660 = vmatprep.mubr.msk.f32.mxu1 %vm265_vm1, %v5447_v8  ;;  %4860 = vmatprep.mubr.msk.f32.mxu0 %vm265_vm1, %v5468_v12  ;;  %v5568_v26 = vld [vmem:[%s5438_s28 + $0xd9] sm:$0xff]  ;;  %v5586_v29 = vld [vmem:[%s5438_s28 + $0xe1] sm:$0xff]  ;;  %v5594_v31 = vld [vmem:[%s5438_s28 + $0xf1] sm:$0xff] }
  0x1b   : > { %6558 = vst [vmem:[#allocation2_spill] sm:$0xff] %v5586_v29  ;;  %v5589_v30 = vld [vmem:[%s5438_s28 + $0x3a] sm:$0xff]  ;;  %6559 = vst [vmem:[#allocation3_spill] sm:$0xff] %v5594_v31  ;;  %v5597_v32 = vld [vmem:[%s5438_s28 + $0x4a] sm:$0xff] }
  0x1c   : > { %v5610_v33 = vld [vmem:[%s5438_s28 + $0xf9] sm:$0xff]  ;;  %v5616_v35 = vld [vmem:[%s5438_s28 + $0x109] sm:$0xff]  ;;  %v5630_v37 = vld [vmem:[%s5438_s28 + $0x111] sm:$0xff] }
  0x1d   : > { %4661 = vmatmul.mubr.msk.f32.gmra.mrb[4].mxu1 %vm265_vm1, %v5462_v11  ;;  %4861 = vmatmul.mubr.msk.f32.gmra.mrb[4].mxu0 %vm265_vm1, %v5481_v13  ;;  %6560 = vst [vmem:[#allocation4_spill] sm:$0xff] %v5610_v33  ;;  %v5613_v34 = vld [vmem:[%s5438_s28 + $0x52] sm:$0xff]  ;;  %6561 = vst [vmem:[#allocation5_spill] sm:$0xff] %v5616_v35  ;;  %v5619_v36 = vld [vmem:[%s5438_s28 + $0x62] sm:$0xff] }
  0x1e   : > { %4663 = vmatprep.mubr.msk.f32.mxu1 %vm265_vm1, %v5468_v12  ;;  %4863 = vmatprep.mubr.msk.f32.mxu0 %vm265_vm1, %v5484_v14  ;;  %6562 = vst [vmem:[#allocation6_spill] sm:$0xff] %v5630_v37  ;;  %v5633_v38 = vld [vmem:[%s5438_s28 + $0x6a] sm:$0xff]  ;;  %v5636_v39 = vld [vmem:[%s5438_s28 + $0x121] sm:$0xff]  ;;  %v5656_v43 = vld [vmem:[%s5438_s28 + $0x139] sm:$0xff] }
  0x1f   : > { %6563 = vst [vmem:[#allocation7_spill] sm:$0xff] %v5636_v39  ;;  %v5639_v40 = vld [vmem:[%s5438_s28 + $0x7a] sm:$0xff]  ;;  %v5650_v41 = vld [vmem:[%s5438_s28 + $0x129] sm:$0xff]  ;;  %6565 = vst [vmem:[#allocation9_spill] sm:$0xff] %v5656_v43 }
  0x20   : > { %6564 = vst [vmem:[#allocation8_spill] sm:$0xff] %v5650_v41  ;;  %v5653_v42 = vld [vmem:[%s5438_s28 + $0x82] sm:$0xff]  ;;  %v5659_v44 = vld [vmem:[%s5438_s28 + $0x92] sm:$0xff]  ;;  %v5673_v46 = vld [vmem:[%s5438_s28 + $0x9a] sm:$0xff] }
  0x21   : > { %4664 = vmatmul.mubr.msk.f32.gmra.mrb[6].mxu1 %vm265_vm1, %v5481_v13  ;;  %4864 = vmatmul.mubr.msk.f32.gmra.mrb[6].mxu0 %vm265_vm1, %v5495_v15  ;;  %v5670_v45 = vld [vmem:[%s5438_s28 + $0x141] sm:$0xff]  ;;  %v5676_v47 = vld [vmem:[%s5438_s28 + $0x151] sm:$0xff]  ;;  %v5690_v49 = vld [vmem:[%s5438_s28 + $0x159] sm:$0xff] }
  0x22   : > { %4666 = vmatprep.mubr.msk.f32.mxu1 %vm265_vm1, %v5484_v14  ;;  %4866 = vmatprep.mubr.msk.f32.mxu0 %vm265_vm1, %v5498_v16  ;;  %6566 = vst [vmem:[#allocation10_spill] sm:$0xff] %v5670_v45  ;;  %6567 = vst [vmem:[#allocation11_spill] sm:$0xff] %v5676_v47  ;;  %v5679_v48 = vld [vmem:[%s5438_s28 + $0xaa] sm:$0xff]  ;;  %v5693_v50 = vld [vmem:[%s5438_s28 + $0xb2] sm:$0xff] }
  0x23   : > { %6568 = vst [vmem:[#allocation12_spill] sm:$0xff] %v5690_v49  ;;  %v5696_v51 = vld [vmem:[%s5438_s28 + $0x169] sm:$0xff]  ;;  %v5710_v53 = vld [vmem:[%s5438_s28 + $0x171] sm:$0xff]  ;;  %v198_v55 = vld [vmem:[%s5438_s28] sm:$0xff] }
  0x24   : > { %6569 = vst [vmem:[#allocation13_spill] sm:$0xff] %v5696_v51  ;;  %v5699_v52 = vld [vmem:[%s5438_s28 + $0xc2] sm:$0xff]  ;;  %6570 = vst [vmem:[#allocation14_spill] sm:$0xff] %v5710_v53  ;;  %v5713_v54 = vld [vmem:[%s5438_s28 + $0xca] sm:$0xff] }
  0x25   : > { %4667 = vmatmul.mubr.msk.f32.gmra.mrb[8].mxu1 %vm265_vm1, %v5495_v15  ;;  %4867 = vmatmul.mubr.msk.f32.gmra.mrb[8].mxu0 %vm265_vm1, %v5509_v17  ;;  %v5717_v56 = vld [vmem:[%s5438_s28 + $0xda] sm:$0xff]  ;;  %v199_v57 = vld [vmem:[%s5438_s28 + $0x8] sm:$0xff]  ;;  %v5734_v60 = vld [vmem:[%s5438_s28 + $0xf2] sm:$0xff] }
  0x26   : > { %4669 = vmatprep.mubr.msk.f32.mxu1 %vm265_vm1, %v5498_v16  ;;  %4869 = vmatprep.mubr.msk.f32.mxu0 %vm265_vm1, %v5512_v18  ;;  %v5728_v58 = vld [vmem:[%s5438_s28 + $0xe2] sm:$0xff]  ;;  %v5731_v59 = vld [vmem:[%s5438_s28 + $0x18] sm:$0xff]  ;;  %v5757_v0 = vld [vmem:[%s5438_s28 + $0x30] sm:$0xff] }
  0x27   : > { %6571 = vst [vmem:[#allocation15_spill] sm:$0xff] %v5731_v59  ;;  %v5749_v62 = vld [vmem:[%s5438_s28 + $0x20] sm:$0xff]  ;;  %6573 = vst [vmem:[#allocation17_spill] sm:$0xff] %v5757_v0  ;;  %v5760_v2 = vld [vmem:[%s5438_s28 + $0x10a] sm:$0xff] }
  0x28   : > { %6572 = vst [vmem:[#allocation16_spill] sm:$0xff] %v5749_v62  ;;  %v5752_v63 = vld [vmem:[%s5438_s28 + $0xfa] sm:$0xff]  ;;  %v5776_v4 = vld [vmem:[%s5438_s28 + $0x112] sm:$0xff]  ;;  %v5779_v5 = vld [vmem:[%s5438_s28 + $0x48] sm:$0xff] }
  0x29   : > { %4670 = vmatmul.mubr.msk.f32.gmra.mrb[10].mxu1 %vm265_vm1, %v5509_v17  ;;  %4870 = vmatmul.mubr.msk.f32.gmra.mrb[10].mxu0 %vm265_vm1, %v5523_v19  ;;  %v5773_v3 = vld [vmem:[%s5438_s28 + $0x38] sm:$0xff]  ;;  %6575 = vst [vmem:[#allocation19_spill] sm:$0xff] %v5779_v5  ;;  %v5782_v6 = vld [vmem:[%s5438_s28 + $0x122] sm:$0xff]  ;;  %v5793_v7 = vld [vmem:[%s5438_s28 + $0x50] sm:$0xff] }
  0x2a   : > { %4672 = vmatprep.mubr.msk.f32.mxu1 %vm265_vm1, %v5512_v18  ;;  %4872 = vmatprep.mubr.msk.f32.mxu0 %vm265_vm1, %v5526_v20  ;;  %6574 = vst [vmem:[#allocation18_spill] sm:$0xff] %v5773_v3  ;;  %6576 = vst [vmem:[#allocation20_spill] sm:$0xff] %v5793_v7 }
  0x2d   : > { %4673 = vmatmul.mubr.msk.f32.gmra.mrb[12].mxu1 %vm265_vm1, %v5523_v19  ;;  %4873 = vmatmul.mubr.msk.f32.gmra.mrb[12].mxu0 %vm265_vm1, %v5537_v21 }
  0x2e   : > { %4675 = vmatprep.mubr.msk.f32.mxu1 %vm265_vm1, %v5526_v20  ;;  %4875 = vmatprep.mubr.msk.f32.mxu0 %vm265_vm1, %v5540_v22 }
  0x31   : > { %4676 = vmatmul.mubr.msk.f32.gmra.mrb[14].mxu1 %vm265_vm1, %v5537_v21  ;;  %4876 = vmatmul.mubr.msk.f32.gmra.mrb[14].mxu0 %vm265_vm1, %v5551_v23 }
  0x32   : > { %4678 = vmatprep.mubr.msk.f32.mxu1 %vm265_vm1, %v5540_v22  ;;  %4904 = vmatprep.mubr.msk.f32.mxu0 %vm265_vm1, %v5554_v24 }
  0x35   : > { %4679 = vmatmul.mubr.msk.f32.gmra.mrb[16].mxu1 %vm265_vm1, %v5551_v23  ;;  %4905 = vmatmul.mubr.msk.f32.vlgmr.msra.gmra.mrb[0].mxu0 %vm265_vm1, %v5565_v25 }
  0x36   : > { %4953 = vmatpush3.msk.msra.mxu0 %vm362_vm0, %v4184_v9  ;;  %4681 = vmatprep.mubr.msk.f32.mxu1 %vm265_vm1, %v5568_v26  ;;  %v5796_v9 = vld [vmem:[%s5438_s28 + $0x12a] sm:$0xff] }
  0x37   : > { %4907 = vmatprep.mubr.msk.f32.mxu0 %vm265_vm1, %v5571_v27  ;;  %5002 = vmatprep.subr.msk.mxu0 %vm362_vm0, %v5576_v28 }
  0x39   : > { %4682 = vmatmul.mubr.msk.f32.gmra.mrb[18].mxu1 %vm265_vm1, %v5586_v29  ;;  %4908 = vmatmul.mubr.msk.f32.gmra.mrb[2].mxu0 %vm265_vm1, %v5589_v30  ;;  %v5893_v29 = vld [vmem:[%s5438_s28 + $0xd8] sm:$0xff] }
  0x3a   : > { %4684 = vmatprep.mubr.msk.f32.mxu1 %vm265_vm1, %v5594_v31  ;;  %4910 = vmatprep.mubr.msk.f32.mxu0 %vm265_vm1, %v5597_v32  ;;  %v5876_v31 = vld [vmem:[%s5438_s28 + $0x18a] sm:$0xff] }
  0x3b   : > { %6587 = vst [vmem:[#allocation31_spill] sm:$0xff] %v5876_v31 }
  0x3d   : > { %4685 = vmatmul.mubr.msk.f32.gmra.mrb[20].mxu1 %vm265_vm1, %v5610_v33  ;;  %4911 = vmatmul.mubr.msk.f32.gmra.mrb[4].mxu0 %vm265_vm1, %v5613_v34  ;;  %v5862_v33 = vld [vmem:[%s5438_s28 + $0x182] sm:$0xff] }
  0x3e   : > { %4687 = vmatprep.mubr.msk.f32.mxu1 %vm265_vm1, %v5616_v35  ;;  %4913 = vmatprep.mubr.msk.f32.mxu0 %vm265_vm1, %v5619_v36  ;;  %v5859_v35 = vld [vmem:[%s5438_s28 + $0xa8] sm:$0xff]  ;;  %6585 = vst [vmem:[#allocation29_spill] sm:$0xff] %v5862_v33 }
  0x3f   : > { %6584 = vst [vmem:[#allocation28_spill] sm:$0xff] %v5859_v35 }
  0x41   : > { %4688 = vmatmul.mubr.msk.f32.gmra.mrb[22].mxu1 %vm265_vm1, %v5630_v37  ;;  %4914 = vmatmul.mubr.msk.f32.gmra.mrb[6].mxu0 %vm265_vm1, %v5633_v38  ;;  %v5856_v37 = vld [vmem:[%s5438_s28 + $0x172] sm:$0xff] }
  0x42   : > { %4690 = vmatprep.mubr.msk.f32.mxu1 %vm265_vm1, %v5636_v39  ;;  %4916 = vmatprep.mubr.msk.f32.mxu0 %vm265_vm1, %v5639_v40  ;;  %v5853_v39 = vld [vmem:[%s5438_s28 + $0x98] sm:$0xff]  ;;  %6583 = vst [vmem:[#allocation27_spill] sm:$0xff] %v5856_v37 }
  0x43   : > { %6582 = vst [vmem:[#allocation26_spill] sm:$0xff] %v5853_v39 }
  0x45   : > { %4691 = vmatmul.mubr.msk.f32.gmra.mrb[24].mxu1 %vm265_vm1, %v5650_v41  ;;  %4917 = vmatmul.mubr.msk.f32.gmra.mrb[8].mxu0 %vm265_vm1, %v5653_v42  ;;  %v5842_v41 = vld [vmem:[%s5438_s28 + $0x16a] sm:$0xff] }
  0x46   : > { %4693 = vmatprep.mubr.msk.f32.mxu1 %vm265_vm1, %v5656_v43  ;;  %4919 = vmatprep.mubr.msk.f32.mxu0 %vm265_vm1, %v5659_v44  ;;  %v5839_v43 = vld [vmem:[%s5438_s28 + $0x90] sm:$0xff] }
  0x47   : > { %6581 = vst [vmem:[#allocation25_spill] sm:$0xff] %v5839_v43 }
  0x49   : > { %4694 = vmatmul.mubr.msk.f32.gmra.mrb[26].mxu1 %vm265_vm1, %v5670_v45  ;;  %4920 = vmatmul.mubr.msk.f32.gmra.mrb[10].mxu0 %vm265_vm1, %v5673_v46  ;;  %v5836_v45 = vld [vmem:[%s5438_s28 + $0x15a] sm:$0xff] }
  0x4a   : > { %4696 = vmatprep.mubr.msk.f32.mxu1 %vm265_vm1, %v5676_v47  ;;  %4922 = vmatprep.mubr.msk.f32.mxu0 %vm265_vm1, %v5679_v48  ;;  %v5833_v47 = vld [vmem:[%s5438_s28 + $0x80] sm:$0xff] }
  0x4b   : > { %6580 = vst [vmem:[#allocation24_spill] sm:$0xff] %v5833_v47 }
  0x4d   : > { %4697 = vmatmul.mubr.msk.f32.gmra.mrb[28].mxu1 %vm265_vm1, %v5690_v49  ;;  %4923 = vmatmul.mubr.msk.f32.gmra.mrb[12].mxu0 %vm265_vm1, %v5693_v50  ;;  %v5822_v49 = vld [vmem:[%s5438_s28 + $0x152] sm:$0xff] }
  0x4e   : > { %4699 = vmatprep.mubr.msk.f32.mxu1 %vm265_vm1, %v5696_v51  ;;  %4925 = vmatprep.mubr.msk.f32.mxu0 %vm265_vm1, %v5699_v52  ;;  %v5819_v51 = vld [vmem:[%s5438_s28 + $0x78] sm:$0xff] }
  0x4f   : > { %6579 = vst [vmem:[#allocation23_spill] sm:$0xff] %v5819_v51 }
  0x51   : > { %4700 = vmatmul.mubr.msk.f32.gmra.mrb[30].mxu1 %vm265_vm1, %v5710_v53  ;;  %4926 = vmatmul.mubr.msk.f32.gmra.mrb[14].mxu0 %vm265_vm1, %v5713_v54  ;;  %v5816_v53 = vld [vmem:[%s5438_s28 + $0x142] sm:$0xff] }
  0x52   : > { %4704 = vmatprep.mubr.msk.f32.mxu1 %vm265_vm1, %v198_v55  ;;  %4928 = vmatprep.mubr.msk.f32.mxu0 %vm265_vm1, %v5717_v56  ;;  %v5802_v55 = vld [vmem:[%s5438_s28 + $0x13a] sm:$0xff] }
  0x55   : > { %4705 = vmatmul.mubr.msk.f32.vlgmr.msra.gmra.mrb[0].mxu1 %vm265_vm1, %v199_v57  ;;  %4929 = vmatmul.mubr.msk.f32.gmra.mrb[16].mxu0 %vm265_vm1, %v5728_v58  ;;  %v5813_v57 = vld [vmem:[%s5438_s28 + $0x68] sm:$0xff] }
  0x56   : > { %4753 = vmatpush3.msk.msra.mxu1 %vm362_vm0, %v5457_v10  ;;  %4707 = vmatprep.mubr.msk.f32.mxu1 %vm265_vm1, %v5731_v59  ;;  %v5799_v10 = vld [vmem:[%s5438_s28 + $0x60] sm:$0xff]  ;;  %6578 = vst [vmem:[#allocation22_spill] sm:$0xff] %v5813_v57 }
  0x57   : > { %4931 = vmatprep.mubr.msk.f32.mxu0 %vm265_vm1, %v5734_v60  ;;  %4802 = vmatprep.subr.msk.mxu1 %vm362_vm0, %v5739_v61  ;;  %6577 = vst [vmem:[#allocation21_spill] sm:$0xff] %v5799_v10  ;;  %v5879_v59 = vld [vmem:[%s5438_s28 + $0xc0] sm:$0xff] }
  0x59   : > { %4708 = vmatmul.mubr.msk.f32.gmra.mrb[2].mxu1 %vm265_vm1, %v5749_v62  ;;  %4932 = vmatmul.mubr.msk.f32.gmra.mrb[18].mxu0 %vm265_vm1, %v5752_v63  ;;  %v5873_v62 = vld [vmem:[%s5438_s28 + $0xb0] sm:$0xff] }
  0x5a   : > { %4710 = vmatprep.mubr.msk.f32.mxu1 %vm265_vm1, %v5757_v0  ;;  %4934 = vmatprep.mubr.msk.f32.mxu0 %vm265_vm1, %v5760_v2  ;;  %6586 = vst [vmem:[#allocation30_spill] sm:$0xff] %v5873_v62 }
  0x5d   : > { %4711 = vmatmul.mubr.msk.f32.gmra.mrb[4].mxu1 %vm265_vm1, %v5773_v3  ;;  %4935 = vmatmul.mubr.msk.f32.gmra.mrb[20].mxu0 %vm265_vm1, %v5776_v4 }
  0x5e   : > { %4713 = vmatprep.mubr.msk.f32.mxu1 %vm265_vm1, %v5779_v5  ;;  %4937 = vmatprep.mubr.msk.f32.mxu0 %vm265_vm1, %v5782_v6 }
  0x61   : > { %4714 = vmatmul.mubr.msk.f32.gmra.mrb[6].mxu1 %vm265_vm1, %v5793_v7  ;;  %4938 = vmatmul.mubr.msk.f32.gmra.mrb[22].mxu0 %vm265_vm1, %v5796_v9 }
  0x62   : > { %4716 = vmatprep.mubr.msk.f32.mxu1 %vm265_vm1, %v5799_v10  ;;  %4940 = vmatprep.mubr.msk.f32.mxu0 %vm265_vm1, %v5802_v55 }
  0x65   : > { %4717 = vmatmul.mubr.msk.f32.gmra.mrb[8].mxu1 %vm265_vm1, %v5813_v57  ;;  %4941 = vmatmul.mubr.msk.f32.gmra.mrb[24].mxu0 %vm265_vm1, %v5816_v53 }
  0x66   : > { %4719 = vmatprep.mubr.msk.f32.mxu1 %vm265_vm1, %v5819_v51  ;;  %4943 = vmatprep.mubr.msk.f32.mxu0 %vm265_vm1, %v5822_v49 }
  0x69   : > { %4720 = vmatmul.mubr.msk.f32.gmra.mrb[10].mxu1 %vm265_vm1, %v5833_v47  ;;  %4944 = vmatmul.mubr.msk.f32.gmra.mrb[26].mxu0 %vm265_vm1, %v5836_v45 }
  0x6a   : > { %4722 = vmatprep.mubr.msk.f32.mxu1 %vm265_vm1, %v5839_v43  ;;  %4946 = vmatprep.mubr.msk.f32.mxu0 %vm265_vm1, %v5842_v41 }
  0x6d   : > { %4723 = vmatmul.mubr.msk.f32.gmra.mrb[12].mxu1 %vm265_vm1, %v5853_v39  ;;  %4947 = vmatmul.mubr.msk.f32.gmra.mrb[28].mxu0 %vm265_vm1, %v5856_v37  ;;  %v5898_v37 = vld [vmem:[%s6509_s1 + $0x20] sm:$0xf] }
  0x6e   : > { %4725 = vmatprep.mubr.msk.f32.mxu1 %vm265_vm1, %v5859_v35  ;;  %4949 = vmatprep.mubr.msk.f32.mxu0 %vm265_vm1, %v5862_v33  ;;  %v5890_v33 = vld [vmem:[%s5438_s28 + $0xc8] sm:$0xff] }
  0x6f   : > { %6588 = vst [vmem:[#allocation32_spill] sm:$0xff] %v5890_v33 }
  0x71   : > { %4726 = vmatmul.mubr.msk.f32.gmra.mrb[14].mxu1 %vm265_vm1, %v5873_v62  ;;  %4950 = vmatmul.mubr.msk.f32.gmra.mrb[30].mxu0 %vm265_vm1, %v5876_v31  ;;  %v5909_v31 = vld [vmem:[%s5438_s28 + $0xe0] sm:$0xff] }
  0x72   : > { %4728 = vmatprep.mubr.msk.f32.mxu1 %vm265_vm1, %v5879_v59  ;;  %4954 = vmatprep.mubr.msk.f32.mxu0 %vm265_vm1, %v5757_v0  ;;  %v5914_v0 = vld [vmem:[%s5438_s28 + $0xf0] sm:$0xff] }
  0x75   : > { %4729 = vmatmul.mubr.msk.f32.gmra.mrb[16].mxu1 %vm265_vm1, %v5890_v33  ;;  %4955 = vmatmul.mubr.msk.f32.vlgmr.msra.gmra.mrb[0].mxu0 %vm265_vm1, %v5773_v3  ;;  %v915_v3 = vld [vmem:[%s5438_s28 + $0x2] sm:$0xff] }
  0x76   : > { %5003 = vmatpush3.msk.msra.mxu0 %vm362_vm0, %v5576_v28  ;;  %4731 = vmatprep.mubr.msk.f32.mxu1 %vm265_vm1, %v5893_v29  ;;  %v5927_v28 = vld [vmem:[%s5438_s28 + $0xf8] sm:$0xff] }
  0x77   : > { %4957 = vmatprep.mubr.msk.f32.mxu0 %vm265_vm1, %v5779_v5  ;;  %5052 = vmatprep.subr.msk.mxu0 %vm362_vm0, %v5898_v37  ;;  %v5930_v5 = vld [vmem:[%s5438_s28 + $0x108] sm:$0xff] }
  0x79   : > { %4732 = vmatmul.mubr.msk.f32.gmra.mrb[18].mxu1 %vm265_vm1, %v5909_v31  ;;  %4958 = vmatmul.mubr.msk.f32.gmra.mrb[2].mxu0 %vm265_vm1, %v5793_v7  ;;  %v5941_v7 = vld [vmem:[%s5438_s28 + $0x110] sm:$0xff] }
  0x7a   : > { %4734 = vmatprep.mubr.msk.f32.mxu1 %vm265_vm1, %v5914_v0  ;;  %4960 = vmatprep.mubr.msk.f32.mxu0 %vm265_vm1, %v5799_v10  ;;  %v5944_v10 = vld [vmem:[%s5438_s28 + $0x120] sm:$0xff] }
  0x7d   : > { %4735 = vmatmul.mubr.msk.f32.gmra.mrb[20].mxu1 %vm265_vm1, %v5927_v28  ;;  %4961 = vmatmul.mubr.msk.f32.gmra.mrb[4].mxu0 %vm265_vm1, %v5813_v57  ;;  %v5955_v57 = vld [vmem:[%s5438_s28 + $0x128] sm:$0xff] }
  0x7e   : > { %4737 = vmatprep.mubr.msk.f32.mxu1 %vm265_vm1, %v5930_v5  ;;  %4963 = vmatprep.mubr.msk.f32.mxu0 %vm265_vm1, %v5819_v51  ;;  %v5958_v51 = vld [vmem:[%s5438_s28 + $0x138] sm:$0xff] }
  0x81   : > { %4738 = vmatmul.mubr.msk.f32.gmra.mrb[22].mxu1 %vm265_vm1, %v5941_v7  ;;  %4964 = vmatmul.mubr.msk.f32.gmra.mrb[6].mxu0 %vm265_vm1, %v5833_v47  ;;  %v5969_v47 = vld [vmem:[%s5438_s28 + $0x140] sm:$0xff] }
  0x82   : > { %4740 = vmatprep.mubr.msk.f32.mxu1 %vm265_vm1, %v5944_v10  ;;  %4966 = vmatprep.mubr.msk.f32.mxu0 %vm265_vm1, %v5839_v43  ;;  %v5972_v43 = vld [vmem:[%s5438_s28 + $0x150] sm:$0xff] }
  0x85   : > { %4741 = vmatmul.mubr.msk.f32.gmra.mrb[24].mxu1 %vm265_vm1, %v5955_v57  ;;  %4967 = vmatmul.mubr.msk.f32.gmra.mrb[8].mxu0 %vm265_vm1, %v5853_v39  ;;  %v5983_v39 = vld [vmem:[%s5438_s28 + $0x158] sm:$0xff] }
  0x86   : > { %4743 = vmatprep.mubr.msk.f32.mxu1 %vm265_vm1, %v5958_v51  ;;  %4969 = vmatprep.mubr.msk.f32.mxu0 %vm265_vm1, %v5859_v35  ;;  %v5986_v35 = vld [vmem:[%s5438_s28 + $0x168] sm:$0xff] }
  0x89   : > { %4744 = vmatmul.mubr.msk.f32.gmra.mrb[26].mxu1 %vm265_vm1, %v5969_v47  ;;  %4970 = vmatmul.mubr.msk.f32.gmra.mrb[10].mxu0 %vm265_vm1, %v5873_v62  ;;  %v5997_v62 = vld [vmem:[%s5438_s28 + $0x170] sm:$0xff] }
  0x8a   : > { %4746 = vmatprep.mubr.msk.f32.mxu1 %vm265_vm1, %v5972_v43  ;;  %4972 = vmatprep.mubr.msk.f32.mxu0 %vm265_vm1, %v5879_v59 }
  0x8d   : > { %4747 = vmatmul.mubr.msk.f32.gmra.mrb[28].mxu1 %vm265_vm1, %v5983_v39  ;;  %4973 = vmatmul.mubr.msk.f32.gmra.mrb[12].mxu0 %vm265_vm1, %v5890_v33  ;;  %v916_v33 = vld [vmem:[%s5438_s28 + $0xa] sm:$0xff] }
  0x8e   : > { %4749 = vmatprep.mubr.msk.f32.mxu1 %vm265_vm1, %v5986_v35  ;;  %4975 = vmatprep.mubr.msk.f32.mxu0 %vm265_vm1, %v5893_v29 }
  0x91   : > { %4750 = vmatmul.mubr.msk.f32.gmra.mrb[30].mxu1 %vm265_vm1, %v5997_v62  ;;  %4976 = vmatmul.mubr.msk.f32.gmra.mrb[14].mxu0 %vm265_vm1, %v5909_v31 }
  0x92   : > { %4754 = vmatprep.mubr.msk.f32.mxu1 %vm265_vm1, %v915_v3  ;;  %4978 = vmatprep.mubr.msk.f32.mxu0 %vm265_vm1, %v5914_v0  ;;  %v6605_v3 = vld [vmem:[#allocation22_spill] sm:$0xff] }
  0x95   : > { %4755 = vmatmul.mubr.msk.f32.vlgmr.msra.gmra.mrb[0].mxu1 %vm265_vm1, %v916_v33  ;;  %4979 = vmatmul.mubr.msk.f32.gmra.mrb[16].mxu0 %vm265_vm1, %v5927_v28  ;;  %v4182_v33 = vld [vmem:[%s5438_s28 + $0x198] sm:$0xff] }
  0x96   : > { %4803 = vmatpush3.msk.msra.mxu1 %vm362_vm0, %v5739_v61  ;;  %4757 = vmatprep.mubr.msk.f32.mxu1 %vm265_vm1, %v5554_v24  ;;  %v6052_v24 = vld [vmem:[%s5438_s28 + $0x180] sm:$0xff] }
  0x97   : > { %4981 = vmatprep.mubr.msk.f32.mxu0 %vm265_vm1, %v5930_v5  ;;  %5102 = vmatprep.subr.msk.mxu1 %vm362_vm0, %v5416_v1  ;;  %v4183_v61 = vld [vmem:[%s5438_s28 + $0x1a0] sm:$0xff] }
  0x99   : > { %4758 = vmatmul.mubr.msk.f32.gmra.mrb[2].mxu1 %vm265_vm1, %v5565_v25  ;;  %4982 = vmatmul.mubr.msk.f32.gmra.mrb[18].mxu0 %vm265_vm1, %v5941_v7  ;;  %v6063_v25 = vld [vmem:[%s5438_s28 + $0x188] sm:$0xff] }
  0x9a   : > { %4760 = vmatprep.mubr.msk.f32.mxu1 %vm265_vm1, %v5571_v27  ;;  %4984 = vmatprep.mubr.msk.f32.mxu0 %vm265_vm1, %v5944_v10 }
  0x9d   : > { %4761 = vmatmul.mubr.msk.f32.gmra.mrb[4].mxu1 %vm265_vm1, %v5589_v30  ;;  %4985 = vmatmul.mubr.msk.f32.gmra.mrb[20].mxu0 %vm265_vm1, %v5955_v57 }
  0x9e   : > { %4763 = vmatprep.mubr.msk.f32.mxu1 %vm265_vm1, %v5597_v32  ;;  %4987 = vmatprep.mubr.msk.f32.mxu0 %vm265_vm1, %v5958_v51 }
  0xa1   : > { %4764 = vmatmul.mubr.msk.f32.gmra.mrb[6].mxu1 %vm265_vm1, %v5613_v34  ;;  %4988 = vmatmul.mubr.msk.f32.gmra.mrb[22].mxu0 %vm265_vm1, %v5969_v47 }
  0xa2   : > { %4766 = vmatprep.mubr.msk.f32.mxu1 %vm265_vm1, %v5619_v36  ;;  %4990 = vmatprep.mubr.msk.f32.mxu0 %vm265_vm1, %v5972_v43 }
  0xa5   : > { %4767 = vmatmul.mubr.msk.f32.gmra.mrb[8].mxu1 %vm265_vm1, %v5633_v38  ;;  %4991 = vmatmul.mubr.msk.f32.gmra.mrb[24].mxu0 %vm265_vm1, %v5983_v39 }
  0xa6   : > { %4769 = vmatprep.mubr.msk.f32.mxu1 %vm265_vm1, %v5639_v40  ;;  %4993 = vmatprep.mubr.msk.f32.mxu0 %vm265_vm1, %v5986_v35 }
  0xa9   : > { %4770 = vmatmul.mubr.msk.f32.gmra.mrb[10].mxu1 %vm265_vm1, %v5653_v42  ;;  %4994 = vmatmul.mubr.msk.f32.gmra.mrb[26].mxu0 %vm265_vm1, %v5997_v62 }
  0xaa   : > { %4772 = vmatprep.mubr.msk.f32.mxu1 %vm265_vm1, %v5659_v44  ;;  %4996 = vmatprep.mubr.msk.f32.mxu0 %vm265_vm1, %v6052_v24 }
  0xad   : > { %4773 = vmatmul.mubr.msk.f32.gmra.mrb[12].mxu1 %vm265_vm1, %v5673_v46  ;;  %4997 = vmatmul.mubr.msk.f32.gmra.mrb[28].mxu0 %vm265_vm1, %v6063_v25 }
  0xae   : > { %4775 = vmatprep.mubr.msk.f32.mxu1 %vm265_vm1, %v5679_v48  ;;  %4999 = vmatprep.mubr.msk.f32.mxu0 %vm265_vm1, %v4182_v33  ;;  %v6606_v33 = vld [vmem:[#allocation10_spill] sm:$0xff] }
  0xb1   : > { %4776 = vmatmul.mubr.msk.f32.gmra.mrb[14].mxu1 %vm265_vm1, %v5693_v50  ;;  %5000 = vmatmul.mubr.msk.f32.gmra.mrb[30].mxu0 %vm265_vm1, %v4183_v61  ;;  %v6607_v61 = vld [vmem:[#allocation23_spill] sm:$0xff] }
  0xb2   : > { %4778 = vmatprep.mubr.msk.f32.mxu1 %vm265_vm1, %v5699_v52  ;;  %5004 = vmatprep.mubr.msk.f32.mxu0 %vm265_vm1, %v5447_v8  ;;  %v6589_v8 = vld [vmem:[#allocation27_spill] sm:$0xff] }
  0xb5   : > { %4779 = vmatmul.mubr.msk.f32.gmra.mrb[16].mxu1 %vm265_vm1, %v5713_v54  ;;  %5005 = vmatmul.mubr.msk.f32.vlgmr.msra.gmra.mrb[0].mxu0 %vm265_vm1, %v5462_v11  ;;  %v6590_v11 = vld [vmem:[#allocation2_spill] sm:$0xff] }
  0xb6   : > { %5053 = vmatpush3.msk.msra.mxu0 %vm362_vm0, %v5898_v37  ;;  %4781 = vmatprep.mubr.msk.f32.mxu1 %vm265_vm1, %v5717_v56  ;;  %v6604_v37 = vld [vmem:[#allocation9_spill] sm:$0xff] }
  0xb7   : > { %5007 = vmatprep.mubr.msk.f32.mxu0 %vm265_vm1, %v5468_v12  ;;  %v6591_v12 = vld [vmem:[#allocation15_spill] sm:$0xff] }
  0xb9   : > { %4782 = vmatmul.mubr.msk.f32.gmra.mrb[18].mxu1 %vm265_vm1, %v5728_v58  ;;  %5008 = vmatmul.mubr.msk.f32.gmra.mrb[2].mxu0 %vm265_vm1, %v5481_v13  ;;  %v6592_v13 = vld [vmem:[#allocation3_spill] sm:$0xff] }
  0xba   : > { %4784 = vmatprep.mubr.msk.f32.mxu1 %vm265_vm1, %v5734_v60  ;;  %5010 = vmatprep.mubr.msk.f32.mxu0 %vm265_vm1, %v5484_v14  ;;  %v6593_v14 = vld [vmem:[#allocation16_spill] sm:$0xff] }
  0xbd   : > { %4785 = vmatmul.mubr.msk.f32.gmra.mrb[20].mxu1 %vm265_vm1, %v5752_v63  ;;  %5011 = vmatmul.mubr.msk.f32.gmra.mrb[4].mxu0 %vm265_vm1, %v5495_v15  ;;  %v6594_v15 = vld [vmem:[#allocation4_spill] sm:$0xff] }
  0xbe   : > { %4787 = vmatprep.mubr.msk.f32.mxu1 %vm265_vm1, %v5760_v2  ;;  %5013 = vmatprep.mubr.msk.f32.mxu0 %vm265_vm1, %v5498_v16  ;;  %v6595_v16 = vld [vmem:[#allocation17_spill] sm:$0xff] }
  0xc1   : > { %4788 = vmatmul.mubr.msk.f32.gmra.mrb[22].mxu1 %vm265_vm1, %v5776_v4  ;;  %5014 = vmatmul.mubr.msk.f32.gmra.mrb[6].mxu0 %vm265_vm1, %v5509_v17  ;;  %v6596_v17 = vld [vmem:[#allocation5_spill] sm:$0xff] }
  0xc2   : > { %4790 = vmatprep.mubr.msk.f32.mxu1 %vm265_vm1, %v5782_v6  ;;  %5016 = vmatprep.mubr.msk.f32.mxu0 %vm265_vm1, %v5512_v18  ;;  %v6597_v18 = vld [vmem:[#allocation18_spill] sm:$0xff] }
  0xc5   : > { %4791 = vmatmul.mubr.msk.f32.gmra.mrb[24].mxu1 %vm265_vm1, %v5796_v9  ;;  %5017 = vmatmul.mubr.msk.f32.gmra.mrb[8].mxu0 %vm265_vm1, %v5523_v19  ;;  %v6598_v19 = vld [vmem:[#allocation6_spill] sm:$0xff] }
  0xc6   : > { %4793 = vmatprep.mubr.msk.f32.mxu1 %vm265_vm1, %v5802_v55  ;;  %5019 = vmatprep.mubr.msk.f32.mxu0 %vm265_vm1, %v5526_v20  ;;  %v6599_v20 = vld [vmem:[#allocation19_spill] sm:$0xff] }
  0xc9   : > { %4794 = vmatmul.mubr.msk.f32.gmra.mrb[26].mxu1 %vm265_vm1, %v5816_v53  ;;  %5020 = vmatmul.mubr.msk.f32.gmra.mrb[10].mxu0 %vm265_vm1, %v5537_v21  ;;  %v6600_v21 = vld [vmem:[#allocation7_spill] sm:$0xff] }
  0xca   : > { %4796 = vmatprep.mubr.msk.f32.mxu1 %vm265_vm1, %v5822_v49  ;;  %5022 = vmatprep.mubr.msk.f32.mxu0 %vm265_vm1, %v5540_v22  ;;  %v6602_v22 = vld [vmem:[#allocation8_spill] sm:$0xff] }
  0xcd   : > { %4797 = vmatmul.mubr.msk.f32.gmra.mrb[28].mxu1 %vm265_vm1, %v5836_v45  ;;  %5023 = vmatmul.mubr.msk.f32.gmra.mrb[12].mxu0 %vm265_vm1, %v5551_v23  ;;  %v6603_v23 = vld [vmem:[#allocation21_spill] sm:$0xff] }
  0xce   : > { %4799 = vmatprep.mubr.msk.f32.mxu1 %vm265_vm1, %v5842_v41  ;;  %5025 = vmatprep.mubr.msk.f32.mxu0 %vm265_vm1, %v5568_v26 }
  0xd1   : > { %4800 = vmatmul.mubr.msk.f32.gmra.mrb[30].mxu1 %vm265_vm1, %v6589_v8  ;;  %5026 = vmatmul.mubr.msk.f32.gmra.mrb[14].mxu0 %vm265_vm1, %v6590_v11  ;;  %v6616_v8 = vld [vmem:[#allocation30_spill] sm:$0xff] }
  0xd2   : > { %4804 = vmatprep.mubr.msk.f32.mxu1 %vm265_vm1, %v6591_v12  ;;  %5028 = vmatprep.mubr.msk.f32.mxu0 %vm265_vm1, %v6592_v13  ;;  %v6608_v12 = vld [vmem:[#allocation11_spill] sm:$0xff] }
  0xd5   : > { %4805 = vmatmul.mubr.msk.f32.vlgmr.msra.gmra.mrb[0].mxu1 %vm265_vm1, %v6593_v14  ;;  %5029 = vmatmul.mubr.msk.f32.gmra.mrb[16].mxu0 %vm265_vm1, %v6594_v15  ;;  %v6609_v14 = vld [vmem:[#allocation24_spill] sm:$0xff] }
  0xd6   : > { %5103 = vmatpush3.msk.msra.mxu1 %vm362_vm0, %v5416_v1  ;;  %4807 = vmatprep.mubr.msk.f32.mxu1 %vm265_vm1, %v6595_v16  ;;  %v6601_v1 = vld [vmem:[#allocation20_spill] sm:$0xff] }
  0xd7   : > { %5031 = vmatprep.mubr.msk.f32.mxu0 %vm265_vm1, %v6596_v17  ;;  %v6610_v16 = vld [vmem:[#allocation12_spill] sm:$0xff] }
  0xd9   : > { %4808 = vmatmul.mubr.msk.f32.gmra.mrb[2].mxu1 %vm265_vm1, %v6597_v18  ;;  %5032 = vmatmul.mubr.msk.f32.gmra.mrb[18].mxu0 %vm265_vm1, %v6598_v19  ;;  %v6611_v18 = vld [vmem:[#allocation25_spill] sm:$0xff] }
  0xda   : > { %4810 = vmatprep.mubr.msk.f32.mxu1 %vm265_vm1, %v6599_v20  ;;  %5034 = vmatprep.mubr.msk.f32.mxu0 %vm265_vm1, %v6600_v21  ;;  %v6612_v20 = vld [vmem:[#allocation13_spill] sm:$0xff] }
  0xdd   : > { %4811 = vmatmul.mubr.msk.f32.gmra.mrb[4].mxu1 %vm265_vm1, %v6601_v1  ;;  %5035 = vmatmul.mubr.msk.f32.gmra.mrb[20].mxu0 %vm265_vm1, %v6602_v22  ;;  %v6190_v1 = vld [vmem:[%s5438_s28 + $0x181] sm:$0xff] }
  0xde   : > { %4813 = vmatprep.mubr.msk.f32.mxu1 %vm265_vm1, %v6603_v23  ;;  %5037 = vmatprep.mubr.msk.f32.mxu0 %vm265_vm1, %v6604_v37  ;;  %v6613_v23 = vld [vmem:[#allocation26_spill] sm:$0xff] }
  0xe1   : > { %4814 = vmatmul.mubr.msk.f32.gmra.mrb[6].mxu1 %vm265_vm1, %v6605_v3  ;;  %5038 = vmatmul.mubr.msk.f32.gmra.mrb[22].mxu0 %vm265_vm1, %v6606_v33  ;;  %v6614_v3 = vld [vmem:[#allocation14_spill] sm:$0xff] }
  0xe2   : > { %4816 = vmatprep.mubr.msk.f32.mxu1 %vm265_vm1, %v6607_v61  ;;  %5040 = vmatprep.mubr.msk.f32.mxu0 %vm265_vm1, %v6608_v12  ;;  %v6615_v61 = vld [vmem:[#allocation28_spill] sm:$0xff] }
  0xe5   : > { %4817 = vmatmul.mubr.msk.f32.gmra.mrb[8].mxu1 %vm265_vm1, %v6609_v14  ;;  %5041 = vmatmul.mubr.msk.f32.gmra.mrb[24].mxu0 %vm265_vm1, %v6610_v16  ;;  %v6201_v14 = vld [vmem:[%s5438_s28 + $0x189] sm:$0xff] }
  0xe6   : > { %4819 = vmatprep.mubr.msk.f32.mxu1 %vm265_vm1, %v6611_v18  ;;  %5043 = vmatprep.mubr.msk.f32.mxu0 %vm265_vm1, %v6612_v20  ;;  %v4248_v18 = vld [vmem:[%s5438_s28 + $0x199] sm:$0xff] }
  0xe9   : > { %4820 = vmatmul.mubr.msk.f32.gmra.mrb[10].mxu1 %vm265_vm1, %v6613_v23  ;;  %5044 = vmatmul.mubr.msk.f32.gmra.mrb[26].mxu0 %vm265_vm1, %v6614_v3  ;;  %v4249_v23 = vld [vmem:[%s5438_s28 + $0x1a1] sm:$0xff]  ;;  %v6617_v3 = vld [vmem:[#allocation32_spill] sm:$0xff] }
  0xea   : > { %4822 = vmatprep.mubr.msk.f32.mxu1 %vm265_vm1, %v6615_v61  ;;  %5046 = vmatprep.mubr.msk.f32.mxu0 %vm265_vm1, %v6190_v1 }
  0xed   : > { %4823 = vmatmul.mubr.msk.f32.gmra.mrb[12].mxu1 %vm265_vm1, %v6616_v8  ;;  %5047 = vmatmul.mubr.msk.f32.gmra.mrb[28].mxu0 %vm265_vm1, %v6201_v14 }
  0xee   : > { %4825 = vmatprep.mubr.msk.f32.mxu1 %vm265_vm1, %v5879_v59  ;;  %5049 = vmatprep.mubr.msk.f32.mxu0 %vm265_vm1, %v4248_v18 }
  0xf1   : > { %4826 = vmatmul.mubr.msk.f32.gmra.mrb[14].mxu1 %vm265_vm1, %v6617_v3  ;;  %5050 = vmatmul.mubr.msk.f32.gmra.mrb[30].mxu0 %vm265_vm1, %v4249_v23 }
  0xf2   : > { %4828 = vmatprep.mubr.msk.f32.mxu1 %vm265_vm1, %v5893_v29  ;;  %5054 = vmatprep.mubr.msk.f32.mxu0 %vm265_vm1, %v5571_v27  ;;  %v6619_v27 = vld [vmem:[#allocation29_spill] sm:$0xff] }
  0xf3   : > { %v4314_v29 = vld [vmem:[%s5438_s28 + $0x19a] sm:$0xff] }
  0xf5   : > { %4829 = vmatmul.mubr.msk.f32.gmra.mrb[16].mxu1 %vm265_vm1, %v5909_v31  ;;  %5055 = vmatmul.mubr.msk.f32.vlgmr.msra.gmra.mrb[0].mxu0 %vm265_vm1, %v5589_v30  ;;  %v6620_v30 = vld [vmem:[#allocation14_spill] sm:$0xff]  ;;  %v6621_v31 = vld [vmem:[#allocation31_spill] sm:$0xff] }
  0xf6   : > { %4831 = vmatprep.mubr.msk.f32.mxu1 %vm265_vm1, %v5914_v0  ;;  %5057 = vmatprep.mubr.msk.f32.mxu0 %vm265_vm1, %v5597_v32  ;;  %v4315_v32 = vld [vmem:[%s5438_s28 + $0x1a2] sm:$0xff] }
  0xf9   : > { %4832 = vmatmul.mubr.msk.f32.gmra.mrb[18].mxu1 %vm265_vm1, %v5927_v28  ;;  %5058 = vmatmul.mubr.msk.f32.gmra.mrb[2].mxu0 %vm265_vm1, %v5613_v34 }
  0xfa   : > { %4834 = vmatprep.mubr.msk.f32.mxu1 %vm265_vm1, %v5930_v5  ;;  %5060 = vmatprep.mubr.msk.f32.mxu0 %vm265_vm1, %v5619_v36 }
  0xfd   : > { %4835 = vmatmul.mubr.msk.f32.gmra.mrb[20].mxu1 %vm265_vm1, %v5941_v7  ;;  %5061 = vmatmul.mubr.msk.f32.gmra.mrb[4].mxu0 %vm265_vm1, %v5633_v38 }
  0xfe   : > { %4837 = vmatprep.mubr.msk.f32.mxu1 %vm265_vm1, %v5944_v10  ;;  %5063 = vmatprep.mubr.msk.f32.mxu0 %vm265_vm1, %v5639_v40 }
 0x101   : > { %4838 = vmatmul.mubr.msk.f32.gmra.mrb[22].mxu1 %vm265_vm1, %v5955_v57  ;;  %5064 = vmatmul.mubr.msk.f32.gmra.mrb[6].mxu0 %vm265_vm1, %v5653_v42 }
 0x102   : > { %4840 = vmatprep.mubr.msk.f32.mxu1 %vm265_vm1, %v5958_v51  ;;  %5066 = vmatprep.mubr.msk.f32.mxu0 %vm265_vm1, %v5659_v44 }
 0x105   : > { %4841 = vmatmul.mubr.msk.f32.gmra.mrb[24].mxu1 %vm265_vm1, %v5969_v47  ;;  %5067 = vmatmul.mubr.msk.f32.gmra.mrb[8].mxu0 %vm265_vm1, %v5673_v46 }
 0x106   : > { %4843 = vmatprep.mubr.msk.f32.mxu1 %vm265_vm1, %v5972_v43  ;;  %5069 = vmatprep.mubr.msk.f32.mxu0 %vm265_vm1, %v5679_v48 }
 0x109   : > { %4844 = vmatmul.mubr.msk.f32.gmra.mrb[26].mxu1 %vm265_vm1, %v5983_v39  ;;  %5070 = vmatmul.mubr.msk.f32.gmra.mrb[10].mxu0 %vm265_vm1, %v5693_v50 }
 0x10a   : > { %4846 = vmatprep.mubr.msk.f32.mxu1 %vm265_vm1, %v5986_v35  ;;  %5072 = vmatprep.mubr.msk.f32.mxu0 %vm265_vm1, %v5699_v52  ;;  %v6358_v52 = vld [vmem:[%s6510_s2] ss:$0 sm:$0xff] }
 0x10d   : > { %4847 = vmatmul.mubr.msk.f32.gmra.mrb[28].mxu1 %vm265_vm1, %v5997_v62  ;;  %5073 = vmatmul.mubr.msk.f32.gmra.mrb[12].mxu0 %vm265_vm1, %v5713_v54 }
 0x10e   : > { %4849 = vmatprep.mubr.msk.f32.mxu1 %vm265_vm1, %v6052_v24  ;;  %5075 = vmatprep.mubr.msk.f32.mxu0 %vm265_vm1, %v5717_v56  ;;  %v6363_v56 = vld [vmem:[%s6511_s3] ss:$0 sm:$0xff] }
 0x111   : > { %4850 = vmatmul.mubr.msk.f32.gmra.mrb[30].mxu1 %vm265_vm1, %v6063_v25  ;;  %5076 = vmatmul.mubr.msk.f32.gmra.mrb[14].mxu0 %vm265_vm1, %v5728_v58 }
 0x112   : > { %4878 = vmatprep.mubr.msk.f32.mxu1 %vm265_vm1, %v5568_v26  ;;  %5078 = vmatprep.mubr.msk.f32.mxu0 %vm265_vm1, %v5734_v60  ;;  %v6618_v26 = vld [vmem:[#allocation27_spill] sm:$0xff] }
 0x115   : > { %4879 = vmatmul.mubr.msk.f32.vlgmr.msra.gmra.mrb[16].mxu1 %vm265_vm1, %v6590_v11  ;;  %5079 = vmatmul.mubr.msk.f32.gmra.mrb[16].mxu0 %vm265_vm1, %v5752_v63 }
 0x116   : > { %4881 = vmatprep.mubr.msk.f32.mxu1 %vm265_vm1, %v6592_v13  ;;  %5081 = vmatprep.mubr.msk.f32.mxu0 %vm265_vm1, %v5760_v2 }
 0x119   : > { %4882 = vmatmul.mubr.msk.f32.gmra.mrb[18].mxu1 %vm265_vm1, %v6594_v15  ;;  %5082 = vmatmul.mubr.msk.f32.gmra.mrb[18].mxu0 %vm265_vm1, %v5776_v4 }
 0x11a   : > { %4884 = vmatprep.mubr.msk.f32.mxu1 %vm265_vm1, %v6596_v17  ;;  %5084 = vmatprep.mubr.msk.f32.mxu0 %vm265_vm1, %v5782_v6 }
 0x11d   : > { %4885 = vmatmul.mubr.msk.f32.gmra.mrb[20].mxu1 %vm265_vm1, %v6598_v19  ;;  %5085 = vmatmul.mubr.msk.f32.gmra.mrb[20].mxu0 %vm265_vm1, %v5796_v9 }
 0x11e   : > { %4887 = vmatprep.mubr.msk.f32.mxu1 %vm265_vm1, %v6600_v21  ;;  %5087 = vmatprep.mubr.msk.f32.mxu0 %vm265_vm1, %v5802_v55 }
 0x121   : > { %4888 = vmatmul.mubr.msk.f32.gmra.mrb[22].mxu1 %vm265_vm1, %v6602_v22  ;;  %5088 = vmatmul.mubr.msk.f32.gmra.mrb[22].mxu0 %vm265_vm1, %v5816_v53 }
 0x122   : > { %4890 = vmatprep.mubr.msk.f32.mxu1 %vm265_vm1, %v6604_v37  ;;  %5090 = vmatprep.mubr.msk.f32.mxu0 %vm265_vm1, %v5822_v49 }
 0x125   : > { %4891 = vmatmul.mubr.msk.f32.gmra.mrb[24].mxu1 %vm265_vm1, %v6606_v33  ;;  %5091 = vmatmul.mubr.msk.f32.gmra.mrb[24].mxu0 %vm265_vm1, %v5836_v45 }
 0x126   : > { %4893 = vmatprep.mubr.msk.f32.mxu1 %vm265_vm1, %v6608_v12  ;;  %5093 = vmatprep.mubr.msk.f32.mxu0 %vm265_vm1, %v5842_v41 }
 0x129   : > { %4894 = vmatmul.mubr.msk.f32.gmra.mrb[26].mxu1 %vm265_vm1, %v6610_v16  ;;  %5094 = vmatmul.mubr.msk.f32.gmra.mrb[26].mxu0 %vm265_vm1, %v6618_v26 }
 0x12a   : > { %4896 = vmatprep.mubr.msk.f32.mxu1 %vm265_vm1, %v6612_v20  ;;  %5096 = vmatprep.mubr.msk.f32.mxu0 %vm265_vm1, %v6619_v27 }
 0x12d   : > { %4897 = vmatmul.mubr.msk.f32.gmra.mrb[28].mxu1 %vm265_vm1, %v6620_v30  ;;  %5097 = vmatmul.mubr.msk.f32.gmra.mrb[28].mxu0 %vm265_vm1, %v6621_v31 }
 0x12e   : > { %4899 = vmatprep.mubr.msk.f32.mxu1 %vm265_vm1, %v6190_v1  ;;  %5099 = vmatprep.mubr.msk.f32.mxu0 %vm265_vm1, %v4314_v29 }
 0x131   : > { %4900 = vmatmul.mubr.msk.f32.gmra.mrb[30].mxu1 %vm265_vm1, %v6201_v14  ;;  %5100 = vmatmul.mubr.msk.f32.gmra.mrb[30].mxu0 %vm265_vm1, %v4315_v32 }
 0x1a8   : > { %v4806_v34 = vpop.f32.mrb[0].mxu1 }
 0x1a9   : > { %v1505_v35 = vpop.f32.mrb[1].mxu1 }
 0x1ac   : > { %v4809_v36 = vpop.f32.mrb[2].mxu1 }
 0x1ad   : > { %v1515_v38 = vpop.f32.mrb[3].mxu1 }
 0x1b0   : > { %v4812_v39 = vpop.f32.mrb[4].mxu1 }
 0x1b1   : > { %v1525_v40 = vpop.f32.mrb[5].mxu1 }
 0x1b4   : > { %v4815_v41 = vpop.f32.mrb[6].mxu1 }
 0x1b5   : > { %v1535_v42 = vpop.f32.mrb[7].mxu1 }
 0x1b8   : > { %v4818_v43 = vpop.f32.mrb[8].mxu1 }
 0x1b9   : > { %v1545_v44 = vpop.f32.mrb[9].mxu1 }
 0x1bc   : > { %v6343_v45 = vpop.f32.mrb[10].mxu1 }
 0x1bd   : > { %v6345_v46 = vpop.f32.mrb[11].mxu1 }
 0x1c0   : > { %v6347_v47 = vpop.f32.mrb[12].mxu1 }
 0x1c1   : > { %v6349_v48 = vpop.f32.mrb[13].mxu1 }
 0x1c4   : > { %v6351_v49 = vpop.f32.mrb[14].mxu1 }
 0x1c5   : > { %v6353_v50 = vpop.f32.mrb[15].mxu1 }
 0x1c8   : > { %v5056_v51 = vpop.f32.mrb[0].mxu0 }
 0x1c9   : > { %v5104_v53 = vadd.f32 %v5056_v51, %v4806_v34  ;;  %v3456_v54 = vpop.f32.mrb[1].mxu0 }
 0x1ca   : > { %v5105_v58 = vadd.f32 %v3456_v54, %v1505_v35 }
 0x1cb   : > { %v3655_v59 = vmul.f32 %v5104_v53, %v6358_v52 }
 0x1cc   : > { %v3654_v60 = vmul.f32 %v5105_v58, %v6358_v52  ;;  %v5059_v62 = vpop.f32.mrb[2].mxu0 }
 0x1cd   : > { %v3694_v63 = vadd.f32 %v6363_v56, %v3655_v59  ;;  %v5106_v0 = vadd.f32 %v5059_v62, %v4809_v36  ;;  %v3466_v2 = vpop.f32.mrb[3].mxu0 }
 0x1ce   : > { %v3693_v4 = vadd.f32 %v6363_v56, %v3654_v60  ;;  %v5107_v5 = vadd.f32 %v3466_v2, %v1515_v38 }
 0x1cf   : > { %v3726_v6 = vmax.f32 %v3694_v63, 0.0  ;;  %v3657_v7 = vmul.f32 %v5106_v0, %v6358_v52 }
 0x1d0   : > { %v3725_v9 = vmax.f32 %v3693_v4, 0.0  ;;  %v3656_v10 = vmul.f32 %v5107_v5, %v6358_v52  ;;  %v5062_v55 = vpop.f32.mrb[4].mxu0 }
 0x1d1   : > { %3759 = vst.msk [vmem:[%s6372_s22 + $0x8] sm:$0xff] %vm3757_vm2, %v3726_v6  ;;  %v3696_v57 = vadd.f32 %v6363_v56, %v3657_v7  ;;  %v5108_v28 = vadd.f32 %v5062_v55, %v4812_v39  ;;  %v3476_v24 = vpop.f32.mrb[5].mxu0 }
 0x1d2   : > { %3758 = vst.msk [vmem:[%s6372_s22] sm:$0xff] %vm3757_vm2, %v3725_v9  ;;  %v3695_v25 = vadd.f32 %v6363_v56, %v3656_v10  ;;  %v5109_v8 = vadd.f32 %v3476_v24, %v1525_v40 }
 0x1d3   : > { %v3728_v11 = vmax.f32 %v3696_v57, 0.0  ;;  %v3659_v13 = vmul.f32 %v5108_v28, %v6358_v52 }
 0x1d4   : > { %v3727_v15 = vmax.f32 %v3695_v25, 0.0  ;;  %v3658_v17 = vmul.f32 %v5109_v8, %v6358_v52  ;;  %v5065_v19 = vpop.f32.mrb[6].mxu0 }
 0x1d5   : > { %3761 = vst.msk [vmem:[%s6372_s22 + $0x18] sm:$0xff] %vm3757_vm2, %v3728_v11  ;;  %v3698_v21 = vadd.f32 %v6363_v56, %v3659_v13  ;;  %v5110_v22 = vadd.f32 %v5065_v19, %v4815_v41  ;;  %v3486_v37 = vpop.f32.mrb[7].mxu0 }
 0x1d6   : > { %3760 = vst.msk [vmem:[%s6372_s22 + $0x10] sm:$0xff] %vm3757_vm2, %v3727_v15  ;;  %v3697_v33 = vadd.f32 %v6363_v56, %v3658_v17  ;;  %v5111_v12 = vadd.f32 %v3486_v37, %v1535_v42 }
 0x1d7   : > { %v3730_v16 = vmax.f32 %v3698_v21, 0.0  ;;  %v3661_v20 = vmul.f32 %v5110_v22, %v6358_v52 }
 0x1d8   : > { %v3729_v1 = vmax.f32 %v3697_v33, 0.0  ;;  %v3660_v3 = vmul.f32 %v5111_v12, %v6358_v52  ;;  %v5068_v61 = vpop.f32.mrb[8].mxu0 }
 0x1d9   : > { %3763 = vst.msk [vmem:[%s6372_s22 + $0x28] sm:$0xff] %vm3757_vm2, %v3730_v16  ;;  %v3700_v14 = vadd.f32 %v6363_v56, %v3661_v20  ;;  %v5112_v18 = vadd.f32 %v5068_v61, %v4818_v43  ;;  %v3496_v23 = vpop.f32.mrb[9].mxu0 }
 0x1da   : > { %3762 = vst.msk [vmem:[%s6372_s22 + $0x20] sm:$0xff] %vm3757_vm2, %v3729_v1  ;;  %v3699_v26 = vadd.f32 %v6363_v56, %v3660_v3  ;;  %v5113_v27 = vadd.f32 %v3496_v23, %v1545_v44 }
 0x1db   : > { %v3732_v29 = vmax.f32 %v3700_v14, 0.0  ;;  %v3663_v30 = vmul.f32 %v5112_v18, %v6358_v52 }
 0x1dc   : > { %v3731_v31 = vmax.f32 %v3699_v26, 0.0  ;;  %v3662_v32 = vmul.f32 %v5113_v27, %v6358_v52  ;;  %v5071_v34 = vpop.f32.mrb[10].mxu0 }
 0x1dd   : > { %3765 = vst.msk [vmem:[%s6372_s22 + $0x38] sm:$0xff] %vm3757_vm2, %v3732_v29  ;;  %v3702_v35 = vadd.f32 %v6363_v56, %v3663_v30  ;;  %v5114_v36 = vadd.f32 %v5071_v34, %v6343_v45  ;;  %v3506_v38 = vpop.f32.mrb[11].mxu0 }
 0x1de   : > { %3764 = vst.msk [vmem:[%s6372_s22 + $0x30] sm:$0xff] %vm3757_vm2, %v3731_v31  ;;  %v3701_v39 = vadd.f32 %v6363_v56, %v3662_v32  ;;  %v5115_v40 = vadd.f32 %v3506_v38, %v6345_v46 }
 0x1df   : > { %v3734_v41 = vmax.f32 %v3702_v35, 0.0  ;;  %v3665_v42 = vmul.f32 %v5114_v36, %v6358_v52 }
 0x1e0   : > { %v3733_v43 = vmax.f32 %v3701_v39, 0.0  ;;  %v3664_v44 = vmul.f32 %v5115_v40, %v6358_v52  ;;  %v5074_v51 = vpop.f32.mrb[12].mxu0 }
 0x1e1   : > { %3767 = vst.msk [vmem:[%s6372_s22 + $0x48] sm:$0xff] %vm3757_vm2, %v3734_v41  ;;  %v3704_v45 = vadd.f32 %v6363_v56, %v3665_v42  ;;  %v5116_v53 = vadd.f32 %v5074_v51, %v6347_v47  ;;  %v3516_v54 = vpop.f32.mrb[13].mxu0 }
 0x1e2   : > { %3766 = vst.msk [vmem:[%s6372_s22 + $0x40] sm:$0xff] %vm3757_vm2, %v3733_v43  ;;  %v3703_v46 = vadd.f32 %v6363_v56, %v3664_v44  ;;  %v5117_v58 = vadd.f32 %v3516_v54, %v6349_v48 }
 0x1e3   : > { %v3736_v59 = vmax.f32 %v3704_v45, 0.0  ;;  %v3667_v60 = vmul.f32 %v5116_v53, %v6358_v52 }
 0x1e4   : > { %v3735_v62 = vmax.f32 %v3703_v46, 0.0  ;;  %v3666_v63 = vmul.f32 %v5117_v58, %v6358_v52  ;;  %v5077_v0 = vpop.f32.mrb[14].mxu0 }
 0x1e5   : > { %3769 = vst.msk [vmem:[%s6372_s22 + $0x58] sm:$0xff] %vm3757_vm2, %v3736_v59  ;;  %v3706_v2 = vadd.f32 %v6363_v56, %v3667_v60  ;;  %v5118_v47 = vadd.f32 %v5077_v0, %v6351_v49  ;;  %v3526_v4 = vpop.f32.mrb[15].mxu0 }
 0x1e6   : > { %3768 = vst.msk [vmem:[%s6372_s22 + $0x50] sm:$0xff] %vm3757_vm2, %v3735_v62  ;;  %v3705_v48 = vadd.f32 %v6363_v56, %v3666_v63  ;;  %v5119_v5 = vadd.f32 %v3526_v4, %v6353_v50 }
 0x1e7   : > { %v3738_v6 = vmax.f32 %v3706_v2, 0.0  ;;  %v3669_v7 = vmul.f32 %v5118_v47, %v6358_v52 }
 0x1e8   : > { %v3737_v9 = vmax.f32 %v3705_v48, 0.0  ;;  %v3668_v10 = vmul.f32 %v5119_v5, %v6358_v52  ;;  %v4880_v55 = vpop.f32.mrb[16].mxu1  ;;  %v5080_v57 = vpop.f32.mrb[16].mxu0 }
 0x1e9   : > { %3771 = vst.msk [vmem:[%s6372_s22 + $0x68] sm:$0xff] %vm3757_vm2, %v3738_v6  ;;  %v3708_v49 = vadd.f32 %v6363_v56, %v3669_v7  ;;  %v5120_v28 = vadd.f32 %v5080_v57, %v4880_v55  ;;  %v1975_v24 = vpop.f32.mrb[17].mxu1  ;;  %v3536_v25 = vpop.f32.mrb[17].mxu0 }
 0x1ea   : > { %3770 = vst.msk [vmem:[%s6372_s22 + $0x60] sm:$0xff] %vm3757_vm2, %v3737_v9  ;;  %v3707_v50 = vadd.f32 %v6363_v56, %v3668_v10  ;;  %v5121_v8 = vadd.f32 %v3536_v25, %v1975_v24 }
 0x1eb   : > { %v3740_v11 = vmax.f32 %v3708_v49, 0.0  ;;  %v3671_v13 = vmul.f32 %v5120_v28, %v6358_v52 }
 0x1ec   : > { %v3739_v15 = vmax.f32 %v3707_v50, 0.0  ;;  %v3670_v17 = vmul.f32 %v5121_v8, %v6358_v52  ;;  %v4883_v19 = vpop.f32.mrb[18].mxu1  ;;  %v5083_v21 = vpop.f32.mrb[18].mxu0 }
 0x1ed   : > { %3773 = vst.msk [vmem:[%s6372_s22 + $0x78] sm:$0xff] %vm3757_vm2, %v3740_v11  ;;  %v3710_v22 = vadd.f32 %v6363_v56, %v3671_v13  ;;  %v5122_v37 = vadd.f32 %v5083_v21, %v4883_v19  ;;  %v1985_v33 = vpop.f32.mrb[19].mxu1  ;;  %v3546_v12 = vpop.f32.mrb[19].mxu0 }
 0x1ee   : > { %3772 = vst.msk [vmem:[%s6372_s22 + $0x70] sm:$0xff] %vm3757_vm2, %v3739_v15  ;;  %v3709_v16 = vadd.f32 %v6363_v56, %v3670_v17  ;;  %v5123_v20 = vadd.f32 %v3546_v12, %v1985_v33 }
 0x1ef   : > { %v3742_v1 = vmax.f32 %v3710_v22, 0.0  ;;  %v3673_v3 = vmul.f32 %v5122_v37, %v6358_v52 }
 0x1f0   : > { %v3741_v61 = vmax.f32 %v3709_v16, 0.0  ;;  %v3672_v14 = vmul.f32 %v5123_v20, %v6358_v52  ;;  %v4886_v18 = vpop.f32.mrb[20].mxu1  ;;  %v5086_v23 = vpop.f32.mrb[20].mxu0 }
 0x1f1   : > { %3775 = vst.msk [vmem:[%s6372_s22 + $0x88] sm:$0xff] %vm3757_vm2, %v3742_v1  ;;  %v3712_v26 = vadd.f32 %v6363_v56, %v3673_v3  ;;  %v5124_v27 = vadd.f32 %v5086_v23, %v4886_v18  ;;  %v1995_v29 = vpop.f32.mrb[21].mxu1  ;;  %v3556_v30 = vpop.f32.mrb[21].mxu0 }
 0x1f2   : > { %3774 = vst.msk [vmem:[%s6372_s22 + $0x80] sm:$0xff] %vm3757_vm2, %v3741_v61  ;;  %v3711_v31 = vadd.f32 %v6363_v56, %v3672_v14  ;;  %v5125_v32 = vadd.f32 %v3556_v30, %v1995_v29 }
 0x1f3   : > { %v3744_v34 = vmax.f32 %v3712_v26, 0.0  ;;  %v3675_v35 = vmul.f32 %v5124_v27, %v6358_v52 }
 0x1f4   : > { %v3743_v36 = vmax.f32 %v3711_v31, 0.0  ;;  %v3674_v38 = vmul.f32 %v5125_v32, %v6358_v52  ;;  %v4889_v39 = vpop.f32.mrb[22].mxu1  ;;  %v5089_v40 = vpop.f32.mrb[22].mxu0 }
 0x1f5   : > { %3777 = vst.msk [vmem:[%s6372_s22 + $0x98] sm:$0xff] %vm3757_vm2, %v3744_v34  ;;  %v3714_v41 = vadd.f32 %v6363_v56, %v3675_v35  ;;  %v5126_v42 = vadd.f32 %v5089_v40, %v4889_v39  ;;  %v2005_v43 = vpop.f32.mrb[23].mxu1  ;;  %v3566_v44 = vpop.f32.mrb[23].mxu0 }
 0x1f6   : > { %3776 = vst.msk [vmem:[%s6372_s22 + $0x90] sm:$0xff] %vm3757_vm2, %v3743_v36  ;;  %v3713_v51 = vadd.f32 %v6363_v56, %v3674_v38  ;;  %v5127_v45 = vadd.f32 %v3566_v44, %v2005_v43 }
 0x1f7   : > { %v3746_v53 = vmax.f32 %v3714_v41, 0.0  ;;  %v3677_v54 = vmul.f32 %v5126_v42, %v6358_v52 }
 0x1f8   : > { %v3745_v46 = vmax.f32 %v3713_v51, 0.0  ;;  %v3676_v58 = vmul.f32 %v5127_v45, %v6358_v52  ;;  %v4892_v59 = vpop.f32.mrb[24].mxu1  ;;  %v5092_v60 = vpop.f32.mrb[24].mxu0 }
 0x1f9   : > { %3779 = vst.msk [vmem:[%s6372_s22 + $0xa8] sm:$0xff] %vm3757_vm2, %v3746_v53  ;;  %v3716_v62 = vadd.f32 %v6363_v56, %v3677_v54  ;;  %v5128_v63 = vadd.f32 %v5092_v60, %v4892_v59  ;;  %v2015_v0 = vpop.f32.mrb[25].mxu1  ;;  %v3576_v2 = vpop.f32.mrb[25].mxu0 }
 0x1fa   : > { %3778 = vst.msk [vmem:[%s6372_s22 + $0xa0] sm:$0xff] %vm3757_vm2, %v3745_v46  ;;  %v3715_v47 = vadd.f32 %v6363_v56, %v3676_v58  ;;  %v5129_v4 = vadd.f32 %v3576_v2, %v2015_v0 }
 0x1fb   : > { %v3748_v48 = vmax.f32 %v3716_v62, 0.0  ;;  %v3679_v5 = vmul.f32 %v5128_v63, %v6358_v52 }
 0x1fc   : > { %v3747_v6 = vmax.f32 %v3715_v47, 0.0  ;;  %v3678_v7 = vmul.f32 %v5129_v4, %v6358_v52  ;;  %v4895_v9 = vpop.f32.mrb[26].mxu1  ;;  %v5095_v10 = vpop.f32.mrb[26].mxu0 }
 0x1fd   : > { %3781 = vst.msk [vmem:[%s6372_s22 + $0xb8] sm:$0xff] %vm3757_vm2, %v3748_v48  ;;  %v3718_v55 = vadd.f32 %v6363_v56, %v3679_v5  ;;  %v5130_v57 = vadd.f32 %v5095_v10, %v4895_v9  ;;  %v2025_v49 = vpop.f32.mrb[27].mxu1  ;;  %v3586_v28 = vpop.f32.mrb[27].mxu0 }
 0x1fe   : > { %3780 = vst.msk [vmem:[%s6372_s22 + $0xb0] sm:$0xff] %vm3757_vm2, %v3747_v6  ;;  %v3717_v24 = vadd.f32 %v6363_v56, %v3678_v7  ;;  %v5131_v25 = vadd.f32 %v3586_v28, %v2025_v49 }
 0x1ff   : > { %v3750_v50 = vmax.f32 %v3718_v55, 0.0  ;;  %v3681_v8 = vmul.f32 %v5130_v57, %v6358_v52 }
 0x200   : > { %v3749_v11 = vmax.f32 %v3717_v24, 0.0  ;;  %v3680_v13 = vmul.f32 %v5131_v25, %v6358_v52  ;;  %v4898_v15 = vpop.f32.mrb[28].mxu1  ;;  %v5098_v17 = vpop.f32.mrb[28].mxu0 }
 0x201   : > { %3783 = vst.msk [vmem:[%s6372_s22 + $0xc8] sm:$0xff] %vm3757_vm2, %v3750_v50  ;;  %v3720_v19 = vadd.f32 %v6363_v56, %v3681_v8  ;;  %v5132_v21 = vadd.f32 %v5098_v17, %v4898_v15  ;;  %v2035_v22 = vpop.f32.mrb[29].mxu1  ;;  %v3596_v37 = vpop.f32.mrb[29].mxu0 }
 0x202   : > { %3782 = vst.msk [vmem:[%s6372_s22 + $0xc0] sm:$0xff] %vm3757_vm2, %v3749_v11  ;;  %v3719_v33 = vadd.f32 %v6363_v56, %v3680_v13  ;;  %v5133_v12 = vadd.f32 %v3596_v37, %v2035_v22 }
 0x203   : > { %v3752_v16 = vmax.f32 %v3720_v19, 0.0  ;;  %v3683_v20 = vmul.f32 %v5132_v21, %v6358_v52 }
 0x204   : > { %v3751_v1 = vmax.f32 %v3719_v33, 0.0  ;;  %v3682_v3 = vmul.f32 %v5133_v12, %v6358_v52  ;;  %v4901_v61 = vpop.f32.mrb[30].mxu1  ;;  %v5101_v14 = vpop.f32.mrb[30].mxu0 }
 0x205   : > { %3785 = vst.msk [vmem:[%s6372_s22 + $0xd8] sm:$0xff] %vm3757_vm2, %v3752_v16  ;;  %v3722_v18 = vadd.f32 %v6363_v56, %v3683_v20  ;;  %v5134_v23 = vadd.f32 %v5101_v14, %v4901_v61  ;;  %v2045_v26 = vpop.f32.mrb[31].mxu1  ;;  %v3606_v27 = vpop.f32.mrb[31].mxu0 }
 0x206   : > { %3784 = vst.msk [vmem:[%s6372_s22 + $0xd0] sm:$0xff] %vm3757_vm2, %v3751_v1  ;;  %v3721_v29 = vadd.f32 %v6363_v56, %v3682_v3  ;;  %v5135_v30 = vadd.f32 %v3606_v27, %v2045_v26 }
 0x207   : > { %v3754_v31 = vmax.f32 %v3722_v18, 0.0  ;;  %v3685_v32 = vmul.f32 %v5134_v23, %v6358_v52 }
 0x208   : > { %v3753_v34 = vmax.f32 %v3721_v29, 0.0  ;;  %v3684_v35 = vmul.f32 %v5135_v30, %v6358_v52 }
 0x209   : > { %3787 = vst.msk [vmem:[%s6372_s22 + $0xe8] sm:$0xff] %vm3757_vm2, %v3754_v31  ;;  %v3724_v36 = vadd.f32 %v6363_v56, %v3685_v32 }
 0x20a   : > { %3786 = vst.msk [vmem:[%s6372_s22 + $0xe0] sm:$0xff] %vm3757_vm2, %v3753_v34  ;;  %v3723_v38 = vadd.f32 %v6363_v56, %v3684_v35 }
 0x20b   : > { %v3756_v39 = vmax.f32 %v3724_v36, 0.0 }
 0x20c   : > { %v3755_v40 = vmax.f32 %v3723_v38, 0.0 }
 0x20d   : > { %3789 = vst.msk [vmem:[%s6372_s22 + $0xf8] sm:$0xff] %vm3757_vm2, %v3756_v39 }
 0x20e   : > { %3788 = vst.msk [vmem:[%s6372_s22 + $0xf0] sm:$0xff] %vm3757_vm2, %v3755_v40 }
 0x20f PF: > { %s14_s15 = sadd.s32 1, %s5375_s15  }
 0x210   : > { %p11_p4 = scmp.ge.s32.totalorder %s14_s15, 4  }
 0x212   :  { %13 = sbr.rel (!%p11_p4) target bundleno = 1 (0x1), region = 76 }

</bundles_post_ra>
